<compile_context>
chip_gen: v7x
topology: tpu7x:2x2x1
jax: 0.10.0
libtpu: 0.0.40
codegen_flags: <defaults>
</compile_context>

<pallas_src>
import functools
import random

import jax
import jax.numpy as jnp
from jax.experimental import pallas as pl
from jax.experimental.pallas import tpu as pltpu

LANE = 128     # f32 lane width
SUBLANE = 8    # f32 sublane width


def _round_up(x, m):
    return ((x + m - 1) // m) * m


# ----------------------------- Pallas kernel --------------------------------

def _lstm_stack_step(x, wih_ref, whh_ref, b_ref, h_ref, c_ref, n_layers, hp):
    """One time step through the LSTM layer stack (updates h_ref/c_ref in place).

    x: [Bp, P] f32; wih_ref/whh_ref: [L, P, 4P] (bf16 storage, f32 math);
    b_ref: [L, 1, 4P] f32; h_ref/c_ref: [L, Bp, P] f32 scratch.
    Returns the top layer's new hidden state.
    """
    for l in range(n_layers):
        h = h_ref[l]
        c = c_ref[l]
        # Two dots (no concat copy).  TODO(synk): on v6e/v7x cast x/h to bf16
        # here for native MXU input; kept f32 for v5e and reference parity.
        gates = (jnp.dot(x, wih_ref[l].astype(jnp.float32),
                         preferred_element_type=jnp.float32)
                 + jnp.dot(h, whh_ref[l].astype(jnp.float32),
                           preferred_element_type=jnp.float32)
                 + b_ref[l])                                        # [Bp, 4P]
        i_g = jax.nn.sigmoid(gates[:, 0 * hp:1 * hp])
        f_g = jax.nn.sigmoid(gates[:, 1 * hp:2 * hp])
        g_g = jnp.tanh(gates[:, 2 * hp:3 * hp])
        o_g = jax.nn.sigmoid(gates[:, 3 * hp:4 * hp])
        c_new = f_g * c + i_g * g_g
        h_new = o_g * jnp.tanh(c_new)
        h_ref[l] = h_new
        c_ref[l] = c_new
        x = h_new
    return x


def _seq2seq_kernel(tf_ref,                                   # scalar prefetch (SMEM)
                    src_emb_ref, trg0_ref, trg_next_ref,      # streamed / tiny inputs
                    enc_wih_ref, enc_whh_ref, enc_b_ref,      # resident weights
                    dec_wih_ref, dec_whh_ref, dec_b_ref,
                    fcw_ref, fcb_ref, emb_tbl_ref,
                    logits_ref,                               # output block [Bp, Vp]
                    h_s, c_s, x_s,                            # VMEM scratch carries
                    *, n_layers, hp, vocab, src_len):
    """grid=(src_len + trg_len - 1,): encoder steps for t < src_len, then
    decoder steps (LSTM stack + vocab projection + greedy top-1 + teacher
    forcing).  h/c carry across the phase boundary in VMEM scratch."""
    t = pl.program_id(0)

    @pl.when(t == 0)
    def _init_state():
        h_s[...] = jnp.zeros_like(h_s)
        c_s[...] = jnp.zeros_like(c_s)

    @pl.when(t < src_len)
    def _encode():
        _lstm_stack_step(src_emb_ref[...], enc_wih_ref, enc_whh_ref, enc_b_ref,
                         h_s, c_s, n_layers, hp)

    @pl.when(t >= src_len)
    def _decode():
        @pl.when(t == src_len)
        def _init_input():
            x_s[...] = trg0_ref[...]                 # embedded trg[0]

        top_h = _lstm_stack_step(x_s[...], dec_wih_ref, dec_whh_ref, dec_b_ref,
                                 h_s, c_s, n_layers, hp)

        logits = (jnp.dot(top_h, fcw_ref[...].astype(jnp.float32),
                          preferred_element_type=jnp.float32)
                  + fcb_ref[...])                                   # [Bp, Vp]
        logits_ref[...] = logits

        # Next-step input (greedy top-1 vs. teacher forcing) is dead work at
        # the last decode step -- skip it there.
        @pl.when(t + 1 < pl.num_programs(0))
        def _next_input():
            bp, vp = logits.shape
            lane_i = jax.lax.broadcasted_iota(jnp.int32, (bp, vp), 1)
            masked = jnp.where(lane_i < vocab, logits, jnp.float32(-1e30))
            row_max = jnp.max(masked, axis=-1, keepdims=True)
            cand = jnp.where(masked == row_max, lane_i, jnp.int32(vp))
            top1 = jnp.min(cand, axis=-1, keepdims=True)   # first max == torch argmax
            onehot = (lane_i == top1).astype(emb_tbl_ref.dtype)
            pred_emb = jnp.dot(onehot, emb_tbl_ref[...],
                               preferred_element_type=jnp.float32)  # [Bp, P]
            teacher = tf_ref[t - src_len + 1] != 0
            # trg_next_ref holds embed(trg[t - src_len + 1]) (streamed).
            x_s[...] = jnp.where(teacher, trg_next_ref[...], pred_emb)


# ------------------------- parameter init / padding -------------------------

def init_params(key, *, input_dim, output_dim, emb_dim, hid_dim, n_layers):
    """Deterministic uniform(-1/sqrt(H), 1/sqrt(H)) init, torch-LSTM style."""
    bound = 1.0 / float(hid_dim) ** 0.5
    n_keys = 4 + 3 * 2 * n_layers
    keys = jax.random.split(key, n_keys)
    ki = iter(range(n_keys))

    def u(shape, scale=bound):
        return jax.random.uniform(keys[next(ki)], shape, jnp.float32,
                                  minval=-scale, maxval=scale)

    params = {
        "enc_emb": u((input_dim, emb_dim), 0.1),
        "dec_emb": u((output_dim, emb_dim), 0.1),
        "fc_w": u((hid_dim, output_dim)),
        "fc_b": u((1, output_dim)),
        "enc_layers": [],
        "dec_layers": [],
    }
    for which in ("enc_layers", "dec_layers"):
        for layer in range(n_layers):
            in_dim = emb_dim if layer == 0 else hid_dim
            params[which].append({
                "w_ih": u((in_dim, 4 * hid_dim)),   # torch weight_ih, transposed
                "w_hh": u((hid_dim, 4 * hid_dim)),  # torch weight_hh, transposed
                "b": u((1, 4 * hid_dim)),           # b_ih + b_hh
            })
    return params


def quantize_weights(params, dtype=jnp.bfloat16):
    """Round-trip the matmul weights through `dtype` (they are stored in that
    dtype inside the kernel) so the f32 reference uses identical values."""
    def q(x):
        return x.astype(dtype).astype(jnp.float32)

    out = dict(params)
    out["fc_w"] = q(params["fc_w"])
    out["dec_emb"] = q(params["dec_emb"])
    for which in ("enc_layers", "dec_layers"):
        out[which] = [{"w_ih": q(lp["w_ih"]), "w_hh": q(lp["w_hh"]), "b": lp["b"]}
                      for lp in params[which]]
    return out


def pad_params(params, *, emb_dim, hid_dim, output_dim,
               weights_dtype=jnp.bfloat16):
    """Pad to TPU-friendly shapes.  P is the common lane width of x/h/c and of
    each gate block; Vp is the lane-dense vocab width.  Zero padding keeps the
    padded lanes of h/c exactly 0 at every step, so the math is unchanged.
    Matmul weights are stored in `weights_dtype` (bf16) to halve residency."""
    P = _round_up(max(emb_dim, hid_dim), LANE)
    Vp = _round_up(output_dim, LANE)

    def pad_gate_cols(w):                            # [rows, 4H] -> [P, 4P]
        rows = w.shape[0]
        w = w.reshape(rows, 4, hid_dim)
        w = jnp.pad(w, ((0, P - rows), (0, 0), (0, P - hid_dim)))
        return w.reshape(P, 4 * P)

    def pad_bias(b):                                 # [1, 4H] -> [1, 4P]
        b = b.reshape(1, 4, hid_dim)
        return jnp.pad(b, ((0, 0), (0, 0), (0, P - hid_dim))).reshape(1, 4 * P)

    def stack_w(layers, key_):
        return jnp.stack([pad_gate_cols(lp[key_]) for lp in layers]
                         ).astype(weights_dtype)     # [L, P, 4P]

    def stack_b(layers):
        return jnp.stack([pad_bias(lp["b"]) for lp in layers])   # [L, 1, 4P] f32

    padded = {
        "enc_w_ih": stack_w(params["enc_layers"], "w_ih"),
        "enc_w_hh": stack_w(params["enc_layers"], "w_hh"),
        "enc_b": stack_b(params["enc_layers"]),
        "dec_w_ih": stack_w(params["dec_layers"], "w_ih"),
        "dec_w_hh": stack_w(params["dec_layers"], "w_hh"),
        "dec_b": stack_b(params["dec_layers"]),
        "fc_w": jnp.pad(params["fc_w"], ((0, P - hid_dim), (0, Vp - output_dim))
                        ).astype(weights_dtype),                     # [P, Vp]
        "fc_b": jnp.pad(params["fc_b"], ((0, 0), (0, Vp - output_dim))),  # [1, Vp]
        "emb_tbl": jnp.pad(params["dec_emb"],
                           ((0, Vp - output_dim), (0, P - emb_dim))
                           ).astype(weights_dtype),                  # [Vp, P]
        # f32 tables used only by the XLA-side embedding gathers:
        "enc_emb": jnp.pad(params["enc_emb"], ((0, 0), (0, P - emb_dim))),
        "dec_emb": jnp.pad(params["dec_emb"], ((0, 0), (0, P - emb_dim))),
    }
    # TODO(synk): at realistic dims give layer 0 its own smaller [emb_pad, 4P]
    # W_ih block, and tile fc_w / emb_tbl over the vocab dim (v7x: 64 MiB VMEM).
    return padded, P, Vp


# ------------------------------- forward ------------------------------------

def build_forward(*, emb_dim, hid_dim, n_layers, output_dim):
    """Returns a jitted forward(padded_params, src, trg, tf_flags)."""
    P = _round_up(max(emb_dim, hid_dim), LANE)
    Vp = _round_up(output_dim, LANE)
    L = n_layers

    def forward(padded, src, trg, tf_flags):
        src_len, batch = src.shape
        trg_len = trg.shape[0]
        n_dec = trg_len - 1
        Bp = max(_round_up(batch, SUBLANE), SUBLANE)
        # TODO(synk): for throughput, batch many more sequences per call (MXU M
        # dim) and add a "parallel" batch-block grid axis to use v7x's 2 TCs.

        src_p = jnp.pad(src, ((0, 0), (0, Bp - batch)))
        trg_p = jnp.pad(trg, ((0, 0), (0, Bp - batch)))
        # Embedding gathers stay in XLA (no in-kernel gather needed).
        src_emb = jnp.take(padded["enc_emb"], src_p, axis=0)   # [src_len, Bp, P]
        trg_emb = jnp.take(padded["dec_emb"], trg_p, axis=0)   # [trg_len, Bp, P]
        trg_emb0 = trg_emb[0]                                  # [Bp, P]
        trg_emb_next = trg_emb[1:]                             # [n_dec, Bp, P]

        # Scoped-VMEM budget from the actual resident set (+50% headroom).
        wbytes = sum(padded[k].size * padded[k].dtype.itemsize
                     for k in ("enc_w_ih", "enc_w_hh", "dec_w_ih", "dec_w_hh",
                               "fc_w", "emb_tbl"))
        bbytes = (2 * L * SUBLANE * 4 * P + SUBLANE * Vp) * 4   # sublane-padded biases
        stream = (2 + 2 + 1) * Bp * P * 4 + 2 * Bp * Vp * 4     # streamed + out bufs
        scratch = (2 * L * Bp * P + Bp * P) * 4                 # h/c/x carries
        vmem_limit = min(max(int(1.5 * (wbytes + bbytes + stream + scratch))
                             + (2 << 20), 32 << 20), 64 << 20)

        def cmap2(t, tf):
            return (0, 0)

        def cmap3(t, tf):
            return (0, 0, 0)

        resident2 = dict(pipeline_mode=pl.Buffered(1))   # constant-index, 1 buffer
        resident3 = dict(pipeline_mode=pl.Buffered(1))

        logits_p = pl.pallas_call(
            functools.partial(_seq2seq_kernel, n_layers=L, hp=P,
                              vocab=output_dim, src_len=src_len),
            out_shape=jax.ShapeDtypeStruct((n_dec, Bp, Vp), jnp.float32),
            grid_spec=pltpu.PrefetchScalarGridSpec(
                num_scalar_prefetch=1,              # teacher-forcing flags -> SMEM
                grid=(src_len + n_dec,),
                in_specs=[
                    # streamed per-step source embedding (double-buffered)
                    pl.BlockSpec((None, Bp, P),
                                 lambda t, tf: (jnp.minimum(t, src_len - 1), 0, 0)),
                    # trg[0] embedding (tiny, resident)
                    pl.BlockSpec((Bp, P), cmap2, **resident2),
                    # streamed next-step target embedding (double-buffered)
                    pl.BlockSpec((None, Bp, P),
                                 lambda t, tf: (jnp.maximum(t - src_len, 0), 0, 0)),
                    # resident weight / bias stacks (single-buffered)
                    pl.BlockSpec((L, P, 4 * P), cmap3, **resident3),   # enc W_ih
                    pl.BlockSpec((L, P, 4 * P), cmap3, **resident3),   # enc W_hh
                    pl.BlockSpec((L, 1, 4 * P), cmap3, **resident3),   # enc b
                    pl.BlockSpec((L, P, 4 * P), cmap3, **resident3),   # dec W_ih
                    pl.BlockSpec((L, P, 4 * P), cmap3, **resident3),   # dec W_hh
                    pl.BlockSpec((L, 1, 4 * P), cmap3, **resident3),   # dec b
                    pl.BlockSpec((P, Vp), cmap2, **resident2),         # fc_w
                    pl.BlockSpec((1, Vp), cmap2, **resident2),         # fc_b
                    pl.BlockSpec((Vp, P), cmap2, **resident2),         # emb table
                ],
                out_specs=pl.BlockSpec(
                    (None, Bp, Vp),
                    lambda t, tf: (jnp.maximum(t - src_len, 0), 0, 0)),
                scratch_shapes=[pltpu.VMEM((L, Bp, P), jnp.float32),   # h carry
                                pltpu.VMEM((L, Bp, P), jnp.float32),   # c carry
                                pltpu.VMEM((Bp, P), jnp.float32)],     # next input emb
            ),
            compiler_params=pltpu.CompilerParams(
                dimension_semantics=("arbitrary",),
                vmem_limit_bytes=vmem_limit),
        )(tf_flags, src_emb, trg_emb0, trg_emb_next,
          padded["enc_w_ih"], padded["enc_w_hh"], padded["enc_b"],
          padded["dec_w_ih"], padded["dec_w_hh"], padded["dec_b"],
          padded["fc_w"], padded["fc_b"], padded["emb_tbl"])

        logits = logits_p[:, :batch, :output_dim]
        zeros0 = jnp.zeros((1, batch, output_dim), jnp.float32)
        return jnp.concatenate([zeros0, logits], axis=0)   # outputs[0] stays 0

    return jax.jit(forward)


# ------------------------- pure-JAX reference (check) ------------------------

def _lstm_cell_ref(x, h, c, w_ih, w_hh, b, hid_dim):
    g = x @ w_ih + h @ w_hh + b
    i = jax.nn.sigmoid(g[:, 0 * hid_dim:1 * hid_dim])
    f = jax.nn.sigmoid(g[:, 1 * hid_dim:2 * hid_dim])
    gg = jnp.tanh(g[:, 2 * hid_dim:3 * hid_dim])
    o = jax.nn.sigmoid(g[:, 3 * hid_dim:4 * hid_dim])
    c2 = f * c + i * gg
    return o * jnp.tanh(c2), c2


def reference_forward(params, src, trg, tf_flags, *, hid_dim, n_layers, output_dim):
    """Un-padded, un-fused mirror of Seq2Seq.forward (for correctness check)."""
    src_len, batch = src.shape
    trg_len = trg.shape[0]
    hs = [jnp.zeros((batch, hid_dim), jnp.float32) for _ in range(n_layers)]
    cs = [jnp.zeros((batch, hid_dim), jnp.float32) for _ in range(n_layers)]
    src_emb = jnp.take(params["enc_emb"], src, axis=0)
    for t in range(src_len):
        x = src_emb[t]
        for l in range(n_layers):
            lp = params["enc_layers"][l]
            hs[l], cs[l] = _lstm_cell_ref(x, hs[l], cs[l], lp["w_ih"], lp["w_hh"],
                                          lp["b"], hid_dim)
            x = hs[l]
    outputs = [jnp.zeros((batch, output_dim), jnp.float32)]
    inp = trg[0]
    for t in range(1, trg_len):
        x = jnp.take(params["dec_emb"], inp, axis=0)
        for l in range(n_layers):
            lp = params["dec_layers"][l]
            hs[l], cs[l] = _lstm_cell_ref(x, hs[l], cs[l], lp["w_ih"], lp["w_hh"],
                                          lp["b"], hid_dim)
            x = hs[l]
        logits = x @ params["fc_w"] + params["fc_b"]
        outputs.append(logits)
        top1 = jnp.argmax(logits, axis=1).astype(trg.dtype)
        inp = jnp.where(tf_flags[t] != 0, trg[t], top1)
    return jnp.stack(outputs, axis=0)


# --------------------------------- Demo --------------------------------------

if __name__ == "__main__":
    INPUT_DIM = 20     # source vocab
    OUTPUT_DIM = 24    # target vocab
    EMB_DIM = 16
    HID_DIM = 32
    N_LAYERS = 2
    SRC_LEN = 8
    TRG_LEN = 8
    BATCH = 2

    key = jax.random.PRNGKey(0)
    kp, ks, kt = jax.random.split(key, 3)
    params = init_params(kp, input_dim=INPUT_DIM, output_dim=OUTPUT_DIM,
                         emb_dim=EMB_DIM, hid_dim=HID_DIM, n_layers=N_LAYERS)
    # Matmul weights live in bf16 inside the kernel; quantize once so the f32
    # reference uses the exact same weight values.
    params = quantize_weights(params, jnp.bfloat16)

    src = jax.random.randint(ks, (SRC_LEN, BATCH), 0, INPUT_DIM, jnp.int32)
    trg = jax.random.randint(kt, (TRG_LEN, BATCH), 0, OUTPUT_DIM, jnp.int32)

    # TODO(synk): host random.random() < ratio has no in-kernel equivalent; the
    # coin flips are precomputed here and scalar-prefetched into SMEM.
    random.seed(0)
    tf_flags = jnp.array(
        [0] + [int(random.random() < 0.5) for _ in range(1, TRG_LEN)], jnp.int32)

    padded, _, _ = pad_params(params, emb_dim=EMB_DIM, hid_dim=HID_DIM,
                              output_dim=OUTPUT_DIM, weights_dtype=jnp.bfloat16)
    forward = build_forward(emb_dim=EMB_DIM, hid_dim=HID_DIM,
                            n_layers=N_LAYERS, output_dim=OUTPUT_DIM)

    outputs = jax.block_until_ready(forward(padded, src, trg, tf_flags))

    assert outputs.shape == (TRG_LEN, BATCH, OUTPUT_DIM)
    assert bool(jnp.all(outputs[0] == 0.0))
    assert bool(jnp.all(jnp.isfinite(outputs)))

    with jax.default_matmul_precision("float32"):
        ref = jax.block_until_ready(
            reference_forward(params, src, trg, tf_flags, hid_dim=HID_DIM,
                              n_layers=N_LAYERS, output_dim=OUTPUT_DIM))
    assert jnp.allclose(outputs, ref, atol=1e-3, rtol=1e-3), (
        "max |diff| = %r" % float(jnp.max(jnp.abs(outputs - ref))))

    print("KERNEL_OK")
</pallas_src>

<mosaic_0001>
module attributes {stable_mosaic.version = 11 : i64} {
  func.func @_seq2seq_kernel(%arg0: i32, %arg1: memref<8xi32, #tpu.memory_space<smem>>, %arg2: memref<1x8x128xf32, #tpu.memory_space<vmem>>, %arg3: memref<8x128xf32, #tpu.memory_space<vmem>>, %arg4: memref<1x8x128xf32, #tpu.memory_space<vmem>>, %arg5: memref<2x128x512xbf16, #tpu.memory_space<vmem>>, %arg6: memref<2x128x512xbf16, #tpu.memory_space<vmem>>, %arg7: memref<2x1x512xf32, #tpu.memory_space<vmem>>, %arg8: memref<2x128x512xbf16, #tpu.memory_space<vmem>>, %arg9: memref<2x128x512xbf16, #tpu.memory_space<vmem>>, %arg10: memref<2x1x512xf32, #tpu.memory_space<vmem>>, %arg11: memref<128x128xbf16, #tpu.memory_space<vmem>>, %arg12: memref<1x128xf32, #tpu.memory_space<vmem>>, %arg13: memref<128x128xbf16, #tpu.memory_space<vmem>>, %arg14: memref<1x8x128xf32, #tpu.memory_space<vmem>>, %arg15: memref<2x8x128xf32, #tpu.memory_space<vmem>>, %arg16: memref<2x8x128xf32, #tpu.memory_space<vmem>>, %arg17: memref<8x128xf32, #tpu.memory_space<vmem>>) attributes {dimension_semantics = [#tpu.dimension_semantics<arbitrary>], iteration_bounds = array<i64: 15>, scalar_prefetch = 1 : i64, scratch_operands = 3 : i64, tpu.core_type = #tpu.core_type<tc>, window_params = [{transform_indices = @transform_0, window_bounds = array<i64: 1, 8, 128>}, {pipeline_mode = #tpu.pipeline_mode<synchronous>, transform_indices = @transform_1, window_bounds = array<i64: 8, 128>}, {transform_indices = @transform_2, window_bounds = array<i64: 1, 8, 128>}, {pipeline_mode = #tpu.pipeline_mode<synchronous>, transform_indices = @transform_3, window_bounds = array<i64: 2, 128, 512>}, {pipeline_mode = #tpu.pipeline_mode<synchronous>, transform_indices = @transform_4, window_bounds = array<i64: 2, 128, 512>}, {pipeline_mode = #tpu.pipeline_mode<synchronous>, transform_indices = @transform_5, window_bounds = array<i64: 2, 1, 512>}, {pipeline_mode = #tpu.pipeline_mode<synchronous>, transform_indices = @transform_6, window_bounds = array<i64: 2, 128, 512>}, {pipeline_mode = #tpu.pipeline_mode<synchronous>, transform_indices = @transform_7, window_bounds = array<i64: 2, 128, 512>}, {pipeline_mode = #tpu.pipeline_mode<synchronous>, transform_indices = @transform_8, window_bounds = array<i64: 2, 1, 512>}, {pipeline_mode = #tpu.pipeline_mode<synchronous>, transform_indices = @transform_9, window_bounds = array<i64: 128, 128>}, {pipeline_mode = #tpu.pipeline_mode<synchronous>, transform_indices = @transform_10, window_bounds = array<i64: 1, 128>}, {pipeline_mode = #tpu.pipeline_mode<synchronous>, transform_indices = @transform_11, window_bounds = array<i64: 128, 128>}, {transform_indices = @transform_12, window_bounds = array<i64: 1, 8, 128>}]} {
    %c0_i32 = arith.constant 0 : i32
    %0 = arith.cmpi eq, %arg0, %c0_i32 : i32
    %1 = arith.extui %0 : i1 to i32
    %c0_i32_0 = arith.constant 0 : i32
    %2 = arith.cmpi ne, %1, %c0_i32_0 : i32
    scf.if %2 {
      %cst = arith.constant 0.000000e+00 : f32
      %9 = vector.broadcast %cst : f32 to vector<2x8x128xf32>
      %c0 = arith.constant 0 : index
      %c0_4 = arith.constant 0 : index
      %c0_5 = arith.constant 0 : index
      %10 = vector.load %arg15[%c0, %c0_4, %c0_5] : memref<2x8x128xf32, #tpu.memory_space<vmem>>, vector<2x8x128xf32>
      tpu.vector_store %arg15[%c0, %c0_4, %c0_5], %9 {strides = array<i32>} : memref<2x8x128xf32, #tpu.memory_space<vmem>>, vector<2x8x128xf32>,
      %cst_6 = arith.constant 0.000000e+00 : f32
      %11 = vector.broadcast %cst_6 : f32 to vector<2x8x128xf32>
      %c0_7 = arith.constant 0 : index
      %c0_8 = arith.constant 0 : index
      %c0_9 = arith.constant 0 : index
      %12 = vector.load %arg16[%c0_7, %c0_8, %c0_9] : memref<2x8x128xf32, #tpu.memory_space<vmem>>, vector<2x8x128xf32>
      tpu.vector_store %arg16[%c0_7, %c0_8, %c0_9], %11 {strides = array<i32>} : memref<2x8x128xf32, #tpu.memory_space<vmem>>, vector<2x8x128xf32>,
    } else {
    }
    %c8_i32 = arith.constant 8 : i32
    %3 = arith.cmpi slt, %arg0, %c8_i32 : i32
    %4 = arith.extui %3 : i1 to i32
    %c0_i32_1 = arith.constant 0 : i32
    %5 = arith.cmpi ne, %4, %c0_i32_1 : i32
    scf.if %5 {
      %c0 = arith.constant 0 : index
      %c0_4 = arith.constant 0 : index
      %c0_5 = arith.constant 0 : index
      %9 = vector.load %arg2[%c0, %c0_4, %c0_5] : memref<1x8x128xf32, #tpu.memory_space<vmem>>, vector<1x8x128xf32>
      %10 = vector.shape_cast %9 : vector<1x8x128xf32> to vector<8x128xf32>
      %c0_6 = arith.constant 0 : index
      %c0_7 = arith.constant 0 : index
      %c0_8 = arith.constant 0 : index
      %11 = vector.load %arg15[%c0_6, %c0_7, %c0_8] : memref<2x8x128xf32, #tpu.memory_space<vmem>>, vector<1x8x128xf32>
      %12 = vector.shape_cast %11 : vector<1x8x128xf32> to vector<8x128xf32>
      %c0_9 = arith.constant 0 : index
      %c0_10 = arith.constant 0 : index
      %c0_11 = arith.constant 0 : index
      %13 = vector.load %arg16[%c0_9, %c0_10, %c0_11] : memref<2x8x128xf32, #tpu.memory_space<vmem>>, vector<1x8x128xf32>
      %14 = vector.shape_cast %13 : vector<1x8x128xf32> to vector<8x128xf32>
      %c0_12 = arith.constant 0 : index
      %c0_13 = arith.constant 0 : index
      %c0_14 = arith.constant 0 : index
      %15 = vector.load %arg5[%c0_12, %c0_13, %c0_14] : memref<2x128x512xbf16, #tpu.memory_space<vmem>>, vector<1x128x512xbf16>
      %16 = vector.shape_cast %15 : vector<1x128x512xbf16> to vector<128x512xbf16>
      %17 = arith.extf %16 : vector<128x512xbf16> to vector<128x512xf32>
      %cst = arith.constant dense<0.000000e+00> : vector<8x512xf32>
      %18 = tpu.matmul %10, %17, %cst {dimension_numbers = #tpu.dot_dimension_numbers<[1], [0], [0], [1], [0, 0, 1, 1], [], []>} : vector<8x128xf32>, vector<128x512xf32>, vector<8x512xf32> -> vector<8x512xf32>
      %c0_15 = arith.constant 0 : index
      %c0_16 = arith.constant 0 : index
      %c0_17 = arith.constant 0 : index
      %19 = vector.load %arg6[%c0_15, %c0_16, %c0_17] : memref<2x128x512xbf16, #tpu.memory_space<vmem>>, vector<1x128x512xbf16>
      %20 = vector.shape_cast %19 : vector<1x128x512xbf16> to vector<128x512xbf16>
      %21 = arith.extf %20 : vector<128x512xbf16> to vector<128x512xf32>
      %cst_18 = arith.constant dense<0.000000e+00> : vector<8x512xf32>
      %22 = tpu.matmul %12, %21, %cst_18 {dimension_numbers = #tpu.dot_dimension_numbers<[1], [0], [0], [1], [0, 0, 1, 1], [], []>} : vector<8x128xf32>, vector<128x512xf32>, vector<8x512xf32> -> vector<8x512xf32>
      %23 = arith.addf %18, %22 : vector<8x512xf32>
      %c0_19 = arith.constant 0 : index
      %c0_20 = arith.constant 0 : index
      %c0_21 = arith.constant 0 : index
      %24 = vector.load %arg7[%c0_19, %c0_20, %c0_21] : memref<2x1x512xf32, #tpu.memory_space<vmem>>, vector<1x1x512xf32>
      %25 = vector.shape_cast %24 : vector<1x1x512xf32> to vector<1x512xf32>
      %26 = vector.broadcast %25 : vector<1x512xf32> to vector<8x512xf32>
      %27 = arith.addf %23, %26 : vector<8x512xf32>
      %28 = vector.extract_strided_slice %27 {offsets = [0, 0], sizes = [8, 128], strides = [1, 1]} : vector<8x512xf32> to vector<8x128xf32>
      %29 = arith.negf %28 : vector<8x128xf32>
      %30 = math.exp %29 : vector<8x128xf32>
      %cst_22 = arith.constant 1.000000e+00 : f32
      %31 = vector.broadcast %cst_22 : f32 to vector<8x128xf32>
      %32 = arith.addf %31, %30 : vector<8x128xf32>
      %33 = arith.divf %31, %32 : vector<8x128xf32>
      %34 = vector.extract_strided_slice %27 {offsets = [0, 128], sizes = [8, 128], strides = [1, 1]} : vector<8x512xf32> to vector<8x128xf32>
      %35 = arith.negf %34 : vector<8x128xf32>
      %36 = math.exp %35 : vector<8x128xf32>
      %cst_23 = arith.constant 1.000000e+00 : f32
      %37 = vector.broadcast %cst_23 : f32 to vector<8x128xf32>
      %38 = arith.addf %37, %36 : vector<8x128xf32>
      %39 = arith.divf %37, %38 : vector<8x128xf32>
      %40 = vector.extract_strided_slice %27 {offsets = [0, 256], sizes = [8, 128], strides = [1, 1]} : vector<8x512xf32> to vector<8x128xf32>
      %41 = math.tanh %40 : vector<8x128xf32>
      %42 = vector.extract_strided_slice %27 {offsets = [0, 384], sizes = [8, 128], strides = [1, 1]} : vector<8x512xf32> to vector<8x128xf32>
      %43 = arith.negf %42 : vector<8x128xf32>
      %44 = math.exp %43 : vector<8x128xf32>
      %cst_24 = arith.constant 1.000000e+00 : f32
      %45 = vector.broadcast %cst_24 : f32 to vector<8x128xf32>
      %46 = arith.addf %45, %44 : vector<8x128xf32>
      %47 = arith.divf %45, %46 : vector<8x128xf32>
      %48 = arith.mulf %39, %14 : vector<8x128xf32>
      %49 = arith.mulf %33, %41 : vector<8x128xf32>
      %50 = arith.addf %48, %49 : vector<8x128xf32>
      %51 = math.tanh %50 : vector<8x128xf32>
      %52 = arith.mulf %47, %51 : vector<8x128xf32>
      %c0_25 = arith.constant 0 : index
      %c0_26 = arith.constant 0 : index
      %c0_27 = arith.constant 0 : index
      %53 = vector.load %arg15[%c0_25, %c0_26, %c0_27] : memref<2x8x128xf32, #tpu.memory_space<vmem>>, vector<1x8x128xf32>
      %54 = vector.shape_cast %53 : vector<1x8x128xf32> to vector<8x128xf32>
      %55 = vector.shape_cast %52 : vector<8x128xf32> to vector<1x8x128xf32>
      tpu.vector_store %arg15[%c0_25, %c0_26, %c0_27], %55 {strides = array<i32>} : memref<2x8x128xf32, #tpu.memory_space<vmem>>, vector<1x8x128xf32>,
      %c0_28 = arith.constant 0 : index
      %c0_29 = arith.constant 0 : index
      %c0_30 = arith.constant 0 : index
      %56 = vector.load %arg16[%c0_28, %c0_29, %c0_30] : memref<2x8x128xf32, #tpu.memory_space<vmem>>, vector<1x8x128xf32>
      %57 = vector.shape_cast %56 : vector<1x8x128xf32> to vector<8x128xf32>
      %58 = vector.shape_cast %50 : vector<8x128xf32> to vector<1x8x128xf32>
      tpu.vector_store %arg16[%c0_28, %c0_29, %c0_30], %58 {strides = array<i32>} : memref<2x8x128xf32, #tpu.memory_space<vmem>>, vector<1x8x128xf32>,
      %c1 = arith.constant 1 : index
      %c0_31 = arith.constant 0 : index
      %c0_32 = arith.constant 0 : index
      %59 = vector.load %arg15[%c1, %c0_31, %c0_32] : memref<2x8x128xf32, #tpu.memory_space<vmem>>, vector<1x8x128xf32>
      %60 = vector.shape_cast %59 : vector<1x8x128xf32> to vector<8x128xf32>
      %c1_33 = arith.constant 1 : index
      %c0_34 = arith.constant 0 : index
      %c0_35 = arith.constant 0 : index
      %61 = vector.load %arg16[%c1_33, %c0_34, %c0_35] : memref<2x8x128xf32, #tpu.memory_space<vmem>>, vector<1x8x128xf32>
      %62 = vector.shape_cast %61 : vector<1x8x128xf32> to vector<8x128xf32>
      %c1_36 = arith.constant 1 : index
      %c0_37 = arith.constant 0 : index
      %c0_38 = arith.constant 0 : index
      %63 = vector.load %arg5[%c1_36, %c0_37, %c0_38] : memref<2x128x512xbf16, #tpu.memory_space<vmem>>, vector<1x128x512xbf16>
      %64 = vector.shape_cast %63 : vector<1x128x512xbf16> to vector<128x512xbf16>
      %65 = arith.extf %64 : vector<128x512xbf16> to vector<128x512xf32>
      %cst_39 = arith.constant dense<0.000000e+00> : vector<8x512xf32>
      %66 = tpu.matmul %52, %65, %cst_39 {dimension_numbers = #tpu.dot_dimension_numbers<[1], [0], [0], [1], [0, 0, 1, 1], [], []>} : vector<8x128xf32>, vector<128x512xf32>, vector<8x512xf32> -> vector<8x512xf32>
      %c1_40 = arith.constant 1 : index
      %c0_41 = arith.constant 0 : index
      %c0_42 = arith.constant 0 : index
      %67 = vector.load %arg6[%c1_40, %c0_41, %c0_42] : memref<2x128x512xbf16, #tpu.memory_space<vmem>>, vector<1x128x512xbf16>
      %68 = vector.shape_cast %67 : vector<1x128x512xbf16> to vector<128x512xbf16>
      %69 = arith.extf %68 : vector<128x512xbf16> to vector<128x512xf32>
      %cst_43 = arith.constant dense<0.000000e+00> : vector<8x512xf32>
      %70 = tpu.matmul %60, %69, %cst_43 {dimension_numbers = #tpu.dot_dimension_numbers<[1], [0], [0], [1], [0, 0, 1, 1], [], []>} : vector<8x128xf32>, vector<128x512xf32>, vector<8x512xf32> -> vector<8x512xf32>
      %71 = arith.addf %66, %70 : vector<8x512xf32>
      %c1_44 = arith.constant 1 : index
      %c0_45 = arith.constant 0 : index
      %c0_46 = arith.constant 0 : index
      %72 = vector.load %arg7[%c1_44, %c0_45, %c0_46] : memref<2x1x512xf32, #tpu.memory_space<vmem>>, vector<1x1x512xf32>
      %73 = vector.shape_cast %72 : vector<1x1x512xf32> to vector<1x512xf32>
      %74 = vector.broadcast %73 : vector<1x512xf32> to vector<8x512xf32>
      %75 = arith.addf %71, %74 : vector<8x512xf32>
      %76 = vector.extract_strided_slice %75 {offsets = [0, 0], sizes = [8, 128], strides = [1, 1]} : vector<8x512xf32> to vector<8x128xf32>
      %77 = arith.negf %76 : vector<8x128xf32>
      %78 = math.exp %77 : vector<8x128xf32>
      %cst_47 = arith.constant 1.000000e+00 : f32
      %79 = vector.broadcast %cst_47 : f32 to vector<8x128xf32>
      %80 = arith.addf %79, %78 : vector<8x128xf32>
      %81 = arith.divf %79, %80 : vector<8x128xf32>
      %82 = vector.extract_strided_slice %75 {offsets = [0, 128], sizes = [8, 128], strides = [1, 1]} : vector<8x512xf32> to vector<8x128xf32>
      %83 = arith.negf %82 : vector<8x128xf32>
      %84 = math.exp %83 : vector<8x128xf32>
      %cst_48 = arith.constant 1.000000e+00 : f32
      %85 = vector.broadcast %cst_48 : f32 to vector<8x128xf32>
      %86 = arith.addf %85, %84 : vector<8x128xf32>
      %87 = arith.divf %85, %86 : vector<8x128xf32>
      %88 = vector.extract_strided_slice %75 {offsets = [0, 256], sizes = [8, 128], strides = [1, 1]} : vector<8x512xf32> to vector<8x128xf32>
      %89 = math.tanh %88 : vector<8x128xf32>
      %90 = vector.extract_strided_slice %75 {offsets = [0, 384], sizes = [8, 128], strides = [1, 1]} : vector<8x512xf32> to vector<8x128xf32>
      %91 = arith.negf %90 : vector<8x128xf32>
      %92 = math.exp %91 : vector<8x128xf32>
      %cst_49 = arith.constant 1.000000e+00 : f32
      %93 = vector.broadcast %cst_49 : f32 to vector<8x128xf32>
      %94 = arith.addf %93, %92 : vector<8x128xf32>
      %95 = arith.divf %93, %94 : vector<8x128xf32>
      %96 = arith.mulf %87, %62 : vector<8x128xf32>
      %97 = arith.mulf %81, %89 : vector<8x128xf32>
      %98 = arith.addf %96, %97 : vector<8x128xf32>
      %99 = math.tanh %98 : vector<8x128xf32>
      %100 = arith.mulf %95, %99 : vector<8x128xf32>
      %c1_50 = arith.constant 1 : index
      %c0_51 = arith.constant 0 : index
      %c0_52 = arith.constant 0 : index
      %101 = vector.load %arg15[%c1_50, %c0_51, %c0_52] : memref<2x8x128xf32, #tpu.memory_space<vmem>>, vector<1x8x128xf32>
      %102 = vector.shape_cast %101 : vector<1x8x128xf32> to vector<8x128xf32>
      %103 = vector.shape_cast %100 : vector<8x128xf32> to vector<1x8x128xf32>
      tpu.vector_store %arg15[%c1_50, %c0_51, %c0_52], %103 {strides = array<i32>} : memref<2x8x128xf32, #tpu.memory_space<vmem>>, vector<1x8x128xf32>,
      %c1_53 = arith.constant 1 : index
      %c0_54 = arith.constant 0 : index
      %c0_55 = arith.constant 0 : index
      %104 = vector.load %arg16[%c1_53, %c0_54, %c0_55] : memref<2x8x128xf32, #tpu.memory_space<vmem>>, vector<1x8x128xf32>
      %105 = vector.shape_cast %104 : vector<1x8x128xf32> to vector<8x128xf32>
      %106 = vector.shape_cast %98 : vector<8x128xf32> to vector<1x8x128xf32>
      tpu.vector_store %arg16[%c1_53, %c0_54, %c0_55], %106 {strides = array<i32>} : memref<2x8x128xf32, #tpu.memory_space<vmem>>, vector<1x8x128xf32>,
    } else {
    }
    %c8_i32_2 = arith.constant 8 : i32
    %6 = arith.cmpi sge, %arg0, %c8_i32_2 : i32
    %7 = arith.extui %6 : i1 to i32
    %c0_i32_3 = arith.constant 0 : i32
    %8 = arith.cmpi ne, %7, %c0_i32_3 : i32
    scf.if %8 {
      %c8_i32_4 = arith.constant 8 : i32
      %9 = arith.cmpi eq, %arg0, %c8_i32_4 : i32
      %10 = arith.extui %9 : i1 to i32
      %c0_i32_5 = arith.constant 0 : i32
      %11 = arith.cmpi ne, %10, %c0_i32_5 : i32
      scf.if %11 {
        %c0_66 = arith.constant 0 : index
        %c0_67 = arith.constant 0 : index
        %122 = vector.load %arg3[%c0_66, %c0_67] : memref<8x128xf32, #tpu.memory_space<vmem>>, vector<8x128xf32>
        %c0_68 = arith.constant 0 : index
        %c0_69 = arith.constant 0 : index
        %123 = vector.load %arg17[%c0_68, %c0_69] : memref<8x128xf32, #tpu.memory_space<vmem>>, vector<8x128xf32>
        tpu.vector_store %arg17[%c0_68, %c0_69], %122 {strides = array<i32>} : memref<8x128xf32, #tpu.memory_space<vmem>>, vector<8x128xf32>,
      } else {
      }
      %c0 = arith.constant 0 : index
      %c0_6 = arith.constant 0 : index
      %12 = vector.load %arg17[%c0, %c0_6] : memref<8x128xf32, #tpu.memory_space<vmem>>, vector<8x128xf32>
      %c0_7 = arith.constant 0 : index
      %c0_8 = arith.constant 0 : index
      %c0_9 = arith.constant 0 : index
      %13 = vector.load %arg15[%c0_7, %c0_8, %c0_9] : memref<2x8x128xf32, #tpu.memory_space<vmem>>, vector<1x8x128xf32>
      %14 = vector.shape_cast %13 : vector<1x8x128xf32> to vector<8x128xf32>
      %c0_10 = arith.constant 0 : index
      %c0_11 = arith.constant 0 : index
      %c0_12 = arith.constant 0 : index
      %15 = vector.load %arg16[%c0_10, %c0_11, %c0_12] : memref<2x8x128xf32, #tpu.memory_space<vmem>>, vector<1x8x128xf32>
      %16 = vector.shape_cast %15 : vector<1x8x128xf32> to vector<8x128xf32>
      %c0_13 = arith.constant 0 : index
      %c0_14 = arith.constant 0 : index
      %c0_15 = arith.constant 0 : index
      %17 = vector.load %arg8[%c0_13, %c0_14, %c0_15] : memref<2x128x512xbf16, #tpu.memory_space<vmem>>, vector<1x128x512xbf16>
      %18 = vector.shape_cast %17 : vector<1x128x512xbf16> to vector<128x512xbf16>
      %19 = arith.extf %18 : vector<128x512xbf16> to vector<128x512xf32>
      %cst = arith.constant dense<0.000000e+00> : vector<8x512xf32>
      %20 = tpu.matmul %12, %19, %cst {dimension_numbers = #tpu.dot_dimension_numbers<[1], [0], [0], [1], [0, 0, 1, 1], [], []>} : vector<8x128xf32>, vector<128x512xf32>, vector<8x512xf32> -> vector<8x512xf32>
      %c0_16 = arith.constant 0 : index
      %c0_17 = arith.constant 0 : index
      %c0_18 = arith.constant 0 : index
      %21 = vector.load %arg9[%c0_16, %c0_17, %c0_18] : memref<2x128x512xbf16, #tpu.memory_space<vmem>>, vector<1x128x512xbf16>
      %22 = vector.shape_cast %21 : vector<1x128x512xbf16> to vector<128x512xbf16>
      %23 = arith.extf %22 : vector<128x512xbf16> to vector<128x512xf32>
      %cst_19 = arith.constant dense<0.000000e+00> : vector<8x512xf32>
      %24 = tpu.matmul %14, %23, %cst_19 {dimension_numbers = #tpu.dot_dimension_numbers<[1], [0], [0], [1], [0, 0, 1, 1], [], []>} : vector<8x128xf32>, vector<128x512xf32>, vector<8x512xf32> -> vector<8x512xf32>
      %25 = arith.addf %20, %24 : vector<8x512xf32>
      %c0_20 = arith.constant 0 : index
      %c0_21 = arith.constant 0 : index
      %c0_22 = arith.constant 0 : index
      %26 = vector.load %arg10[%c0_20, %c0_21, %c0_22] : memref<2x1x512xf32, #tpu.memory_space<vmem>>, vector<1x1x512xf32>
      %27 = vector.shape_cast %26 : vector<1x1x512xf32> to vector<1x512xf32>
      %28 = vector.broadcast %27 : vector<1x512xf32> to vector<8x512xf32>
      %29 = arith.addf %25, %28 : vector<8x512xf32>
      %30 = vector.extract_strided_slice %29 {offsets = [0, 0], sizes = [8, 128], strides = [1, 1]} : vector<8x512xf32> to vector<8x128xf32>
      %31 = arith.negf %30 : vector<8x128xf32>
      %32 = math.exp %31 : vector<8x128xf32>
      %cst_23 = arith.constant 1.000000e+00 : f32
      %33 = vector.broadcast %cst_23 : f32 to vector<8x128xf32>
      %34 = arith.addf %33, %32 : vector<8x128xf32>
      %35 = arith.divf %33, %34 : vector<8x128xf32>
      %36 = vector.extract_strided_slice %29 {offsets = [0, 128], sizes = [8, 128], strides = [1, 1]} : vector<8x512xf32> to vector<8x128xf32>
      %37 = arith.negf %36 : vector<8x128xf32>
      %38 = math.exp %37 : vector<8x128xf32>
      %cst_24 = arith.constant 1.000000e+00 : f32
      %39 = vector.broadcast %cst_24 : f32 to vector<8x128xf32>
      %40 = arith.addf %39, %38 : vector<8x128xf32>
      %41 = arith.divf %39, %40 : vector<8x128xf32>
      %42 = vector.extract_strided_slice %29 {offsets = [0, 256], sizes = [8, 128], strides = [1, 1]} : vector<8x512xf32> to vector<8x128xf32>
      %43 = math.tanh %42 : vector<8x128xf32>
      %44 = vector.extract_strided_slice %29 {offsets = [0, 384], sizes = [8, 128], strides = [1, 1]} : vector<8x512xf32> to vector<8x128xf32>
      %45 = arith.negf %44 : vector<8x128xf32>
      %46 = math.exp %45 : vector<8x128xf32>
      %cst_25 = arith.constant 1.000000e+00 : f32
      %47 = vector.broadcast %cst_25 : f32 to vector<8x128xf32>
      %48 = arith.addf %47, %46 : vector<8x128xf32>
      %49 = arith.divf %47, %48 : vector<8x128xf32>
      %50 = arith.mulf %41, %16 : vector<8x128xf32>
      %51 = arith.mulf %35, %43 : vector<8x128xf32>
      %52 = arith.addf %50, %51 : vector<8x128xf32>
      %53 = math.tanh %52 : vector<8x128xf32>
      %54 = arith.mulf %49, %53 : vector<8x128xf32>
      %c0_26 = arith.constant 0 : index
      %c0_27 = arith.constant 0 : index
      %c0_28 = arith.constant 0 : index
      %55 = vector.load %arg15[%c0_26, %c0_27, %c0_28] : memref<2x8x128xf32, #tpu.memory_space<vmem>>, vector<1x8x128xf32>
      %56 = vector.shape_cast %55 : vector<1x8x128xf32> to vector<8x128xf32>
      %57 = vector.shape_cast %54 : vector<8x128xf32> to vector<1x8x128xf32>
      tpu.vector_store %arg15[%c0_26, %c0_27, %c0_28], %57 {strides = array<i32>} : memref<2x8x128xf32, #tpu.memory_space<vmem>>, vector<1x8x128xf32>,
      %c0_29 = arith.constant 0 : index
      %c0_30 = arith.constant 0 : index
      %c0_31 = arith.constant 0 : index
      %58 = vector.load %arg16[%c0_29, %c0_30, %c0_31] : memref<2x8x128xf32, #tpu.memory_space<vmem>>, vector<1x8x128xf32>
      %59 = vector.shape_cast %58 : vector<1x8x128xf32> to vector<8x128xf32>
      %60 = vector.shape_cast %52 : vector<8x128xf32> to vector<1x8x128xf32>
      tpu.vector_store %arg16[%c0_29, %c0_30, %c0_31], %60 {strides = array<i32>} : memref<2x8x128xf32, #tpu.memory_space<vmem>>, vector<1x8x128xf32>,
      %c1 = arith.constant 1 : index
      %c0_32 = arith.constant 0 : index
      %c0_33 = arith.constant 0 : index
      %61 = vector.load %arg15[%c1, %c0_32, %c0_33] : memref<2x8x128xf32, #tpu.memory_space<vmem>>, vector<1x8x128xf32>
      %62 = vector.shape_cast %61 : vector<1x8x128xf32> to vector<8x128xf32>
      %c1_34 = arith.constant 1 : index
      %c0_35 = arith.constant 0 : index
      %c0_36 = arith.constant 0 : index
      %63 = vector.load %arg16[%c1_34, %c0_35, %c0_36] : memref<2x8x128xf32, #tpu.memory_space<vmem>>, vector<1x8x128xf32>
      %64 = vector.shape_cast %63 : vector<1x8x128xf32> to vector<8x128xf32>
      %c1_37 = arith.constant 1 : index
      %c0_38 = arith.constant 0 : index
      %c0_39 = arith.constant 0 : index
      %65 = vector.load %arg8[%c1_37, %c0_38, %c0_39] : memref<2x128x512xbf16, #tpu.memory_space<vmem>>, vector<1x128x512xbf16>
      %66 = vector.shape_cast %65 : vector<1x128x512xbf16> to vector<128x512xbf16>
      %67 = arith.extf %66 : vector<128x512xbf16> to vector<128x512xf32>
      %cst_40 = arith.constant dense<0.000000e+00> : vector<8x512xf32>
      %68 = tpu.matmul %54, %67, %cst_40 {dimension_numbers = #tpu.dot_dimension_numbers<[1], [0], [0], [1], [0, 0, 1, 1], [], []>} : vector<8x128xf32>, vector<128x512xf32>, vector<8x512xf32> -> vector<8x512xf32>
      %c1_41 = arith.constant 1 : index
      %c0_42 = arith.constant 0 : index
      %c0_43 = arith.constant 0 : index
      %69 = vector.load %arg9[%c1_41, %c0_42, %c0_43] : memref<2x128x512xbf16, #tpu.memory_space<vmem>>, vector<1x128x512xbf16>
      %70 = vector.shape_cast %69 : vector<1x128x512xbf16> to vector<128x512xbf16>
      %71 = arith.extf %70 : vector<128x512xbf16> to vector<128x512xf32>
      %cst_44 = arith.constant dense<0.000000e+00> : vector<8x512xf32>
      %72 = tpu.matmul %62, %71, %cst_44 {dimension_numbers = #tpu.dot_dimension_numbers<[1], [0], [0], [1], [0, 0, 1, 1], [], []>} : vector<8x128xf32>, vector<128x512xf32>, vector<8x512xf32> -> vector<8x512xf32>
      %73 = arith.addf %68, %72 : vector<8x512xf32>
      %c1_45 = arith.constant 1 : index
      %c0_46 = arith.constant 0 : index
      %c0_47 = arith.constant 0 : index
      %74 = vector.load %arg10[%c1_45, %c0_46, %c0_47] : memref<2x1x512xf32, #tpu.memory_space<vmem>>, vector<1x1x512xf32>
      %75 = vector.shape_cast %74 : vector<1x1x512xf32> to vector<1x512xf32>
      %76 = vector.broadcast %75 : vector<1x512xf32> to vector<8x512xf32>
      %77 = arith.addf %73, %76 : vector<8x512xf32>
      %78 = vector.extract_strided_slice %77 {offsets = [0, 0], sizes = [8, 128], strides = [1, 1]} : vector<8x512xf32> to vector<8x128xf32>
      %79 = arith.negf %78 : vector<8x128xf32>
      %80 = math.exp %79 : vector<8x128xf32>
      %cst_48 = arith.constant 1.000000e+00 : f32
      %81 = vector.broadcast %cst_48 : f32 to vector<8x128xf32>
      %82 = arith.addf %81, %80 : vector<8x128xf32>
      %83 = arith.divf %81, %82 : vector<8x128xf32>
      %84 = vector.extract_strided_slice %77 {offsets = [0, 128], sizes = [8, 128], strides = [1, 1]} : vector<8x512xf32> to vector<8x128xf32>
      %85 = arith.negf %84 : vector<8x128xf32>
      %86 = math.exp %85 : vector<8x128xf32>
      %cst_49 = arith.constant 1.000000e+00 : f32
      %87 = vector.broadcast %cst_49 : f32 to vector<8x128xf32>
      %88 = arith.addf %87, %86 : vector<8x128xf32>
      %89 = arith.divf %87, %88 : vector<8x128xf32>
      %90 = vector.extract_strided_slice %77 {offsets = [0, 256], sizes = [8, 128], strides = [1, 1]} : vector<8x512xf32> to vector<8x128xf32>
      %91 = math.tanh %90 : vector<8x128xf32>
      %92 = vector.extract_strided_slice %77 {offsets = [0, 384], sizes = [8, 128], strides = [1, 1]} : vector<8x512xf32> to vector<8x128xf32>
      %93 = arith.negf %92 : vector<8x128xf32>
      %94 = math.exp %93 : vector<8x128xf32>
      %cst_50 = arith.constant 1.000000e+00 : f32
      %95 = vector.broadcast %cst_50 : f32 to vector<8x128xf32>
      %96 = arith.addf %95, %94 : vector<8x128xf32>
      %97 = arith.divf %95, %96 : vector<8x128xf32>
      %98 = arith.mulf %89, %64 : vector<8x128xf32>
      %99 = arith.mulf %83, %91 : vector<8x128xf32>
      %100 = arith.addf %98, %99 : vector<8x128xf32>
      %101 = math.tanh %100 : vector<8x128xf32>
      %102 = arith.mulf %97, %101 : vector<8x128xf32>
      %c1_51 = arith.constant 1 : index
      %c0_52 = arith.constant 0 : index
      %c0_53 = arith.constant 0 : index
      %103 = vector.load %arg15[%c1_51, %c0_52, %c0_53] : memref<2x8x128xf32, #tpu.memory_space<vmem>>, vector<1x8x128xf32>
      %104 = vector.shape_cast %103 : vector<1x8x128xf32> to vector<8x128xf32>
      %105 = vector.shape_cast %102 : vector<8x128xf32> to vector<1x8x128xf32>
      tpu.vector_store %arg15[%c1_51, %c0_52, %c0_53], %105 {strides = array<i32>} : memref<2x8x128xf32, #tpu.memory_space<vmem>>, vector<1x8x128xf32>,
      %c1_54 = arith.constant 1 : index
      %c0_55 = arith.constant 0 : index
      %c0_56 = arith.constant 0 : index
      %106 = vector.load %arg16[%c1_54, %c0_55, %c0_56] : memref<2x8x128xf32, #tpu.memory_space<vmem>>, vector<1x8x128xf32>
      %107 = vector.shape_cast %106 : vector<1x8x128xf32> to vector<8x128xf32>
      %108 = vector.shape_cast %100 : vector<8x128xf32> to vector<1x8x128xf32>
      tpu.vector_store %arg16[%c1_54, %c0_55, %c0_56], %108 {strides = array<i32>} : memref<2x8x128xf32, #tpu.memory_space<vmem>>, vector<1x8x128xf32>,
      %c0_57 = arith.constant 0 : index
      %c0_58 = arith.constant 0 : index
      %109 = vector.load %arg11[%c0_57, %c0_58] : memref<128x128xbf16, #tpu.memory_space<vmem>>, vector<128x128xbf16>
      %110 = arith.extf %109 : vector<128x128xbf16> to vector<128x128xf32>
      %cst_59 = arith.constant dense<0.000000e+00> : vector<8x128xf32>
      %111 = tpu.matmul %102, %110, %cst_59 {dimension_numbers = #tpu.dot_dimension_numbers<[1], [0], [0], [1], [0, 0, 1, 1], [], []>} : vector<8x128xf32>, vector<128x128xf32>, vector<8x128xf32> -> vector<8x128xf32>
      %c0_60 = arith.constant 0 : index
      %c0_61 = arith.constant 0 : index
      %112 = vector.load %arg12[%c0_60, %c0_61] : memref<1x128xf32, #tpu.memory_space<vmem>>, vector<1x128xf32>
      %113 = vector.broadcast %112 : vector<1x128xf32> to vector<8x128xf32>
      %114 = arith.addf %111, %113 : vector<8x128xf32>
      %c0_62 = arith.constant 0 : index
      %c0_63 = arith.constant 0 : index
      %c0_64 = arith.constant 0 : index
      %115 = vector.load %arg14[%c0_62, %c0_63, %c0_64] : memref<1x8x128xf32, #tpu.memory_space<vmem>>, vector<1x8x128xf32>
      %116 = vector.shape_cast %115 : vector<1x8x128xf32> to vector<8x128xf32>
      %117 = vector.shape_cast %114 : vector<8x128xf32> to vector<1x8x128xf32>
      tpu.vector_store %arg14[%c0_62, %c0_63, %c0_64], %117 {strides = array<i32>} : memref<1x8x128xf32, #tpu.memory_space<vmem>>, vector<1x8x128xf32>,
      %c1_i32 = arith.constant 1 : i32
      %118 = arith.addi %arg0, %c1_i32 : i32
      %c15_i32 = arith.constant 15 : i32
      %119 = arith.cmpi slt, %118, %c15_i32 : i32
      %120 = arith.extui %119 : i1 to i32
      %c0_i32_65 = arith.constant 0 : i32
      %121 = arith.cmpi ne, %120, %c0_i32_65 : i32
      scf.if %121 {
        %122 = tpu.iota {dimensions = array<i32: 1>} : vector<8x128xi32>
        %c24_i32 = arith.constant 24 : i32
        %123 = vector.broadcast %c24_i32 : i32 to vector<8x128xi32>
        %124 = arith.cmpi slt, %122, %123 : vector<8x128xi32>
        %cst_66 = arith.constant -1.000000e+30 : f32
        %125 = vector.broadcast %cst_66 : f32 to vector<8x128xf32>
        %126 = arith.select %124, %114, %125 : vector<8x128xi1>, vector<8x128xf32>
        %cst_67 = arith.constant dense<0xFF800000> : vector<8xf32>
        %127 = vector.multi_reduction <maximumf>, %126, %cst_67 [1] : vector<8x128xf32> to vector<8xf32>
        %128 = vector.shape_cast %127 : vector<8xf32> to vector<8x1xf32>
        %129 = vector.broadcast %128 : vector<8x1xf32> to vector<8x128xf32>
        %130 = arith.cmpf oeq, %126, %129 : vector<8x128xf32>
        %c128_i32 = arith.constant 128 : i32
        %131 = vector.broadcast %c128_i32 : i32 to vector<8x128xi32>
        %132 = arith.select %130, %122, %131 : vector<8x128xi1>, vector<8x128xi32>
        %cst_68 = arith.constant dense<2147483647> : vector<8xi32>
        %133 = vector.multi_reduction <minsi>, %132, %cst_68 [1] : vector<8x128xi32> to vector<8xi32>
        %134 = vector.shape_cast %133 : vector<8xi32> to vector<8x1xi32>
        %135 = vector.broadcast %134 : vector<8x1xi32> to vector<8x128xi32>
        %136 = arith.cmpi eq, %122, %135 : vector<8x128xi32>
        %137 = arith.extui %136 : vector<8x128xi1> to vector<8x128xi32>
        %138 = arith.sitofp %137 : vector<8x128xi32> to vector<8x128xf32>
        %139 = arith.truncf %138 : vector<8x128xf32> to vector<8x128xbf16>
        %c0_69 = arith.constant 0 : index
        %c0_70 = arith.constant 0 : index
        %140 = vector.load %arg13[%c0_69, %c0_70] : memref<128x128xbf16, #tpu.memory_space<vmem>>, vector<128x128xbf16>
        %cst_71 = arith.constant dense<0.000000e+00> : vector<8x128xf32>
        %141 = tpu.matmul %139, %140, %cst_71 {dimension_numbers = #tpu.dot_dimension_numbers<[1], [0], [0], [1], [0, 0, 1, 1], [], []>} : vector<8x128xbf16>, vector<128x128xbf16>, vector<8x128xf32> -> vector<8x128xf32>
        %c8_i32_72 = arith.constant 8 : i32
        %142 = arith.subi %arg0, %c8_i32_72 : i32
        %c1_i32_73 = arith.constant 1 : i32
        %143 = arith.addi %142, %c1_i32_73 : i32
        %144 = arith.index_cast %143 : i32 to index
        %145 = memref.load %arg1[%144] : memref<8xi32, #tpu.memory_space<smem>>
        %c0_i32_74 = arith.constant 0 : i32
        %146 = arith.cmpi ne, %145, %c0_i32_74 : i32
        %c0_75 = arith.constant 0 : index
        %c0_76 = arith.constant 0 : index
        %c0_77 = arith.constant 0 : index
        %147 = vector.load %arg4[%c0_75, %c0_76, %c0_77] : memref<1x8x128xf32, #tpu.memory_space<vmem>>, vector<1x8x128xf32>
        %148 = vector.shape_cast %147 : vector<1x8x128xf32> to vector<8x128xf32>
        %149 = arith.select %146, %148, %141 : vector<8x128xf32>
        %c0_78 = arith.constant 0 : index
        %c0_79 = arith.constant 0 : index
        %150 = vector.load %arg17[%c0_78, %c0_79] : memref<8x128xf32, #tpu.memory_space<vmem>>, vector<8x128xf32>
        tpu.vector_store %arg17[%c0_78, %c0_79], %149 {strides = array<i32>} : memref<8x128xf32, #tpu.memory_space<vmem>>, vector<8x128xf32>,
      } else {
      }
    } else {
    }
    return
  }
  func.func @transform_0(%arg0: i32, %arg1: memref<8xi32, #tpu.memory_space<smem>>) -> (i32, i32, i32) {
    %c7_i32 = arith.constant 7 : i32
    %0 = arith.minsi %arg0, %c7_i32 : i32
    %c0_i32 = arith.constant 0 : i32
    %c0_i32_0 = arith.constant 0 : i32
    %c0_i32_1 = arith.constant 0 : i32
    return %0, %c0_i32, %c0_i32_0 : i32, i32, i32
  }
  func.func @transform_1(%arg0: i32, %arg1: memref<8xi32, #tpu.memory_space<smem>>) -> (i32, i32) {
    %c0_i32 = arith.constant 0 : i32
    %c0_i32_0 = arith.constant 0 : i32
    %c0_i32_1 = arith.constant 0 : i32
    return %c0_i32, %c0_i32_0 : i32, i32
  }
  func.func @transform_2(%arg0: i32, %arg1: memref<8xi32, #tpu.memory_space<smem>>) -> (i32, i32, i32) {
    %c8_i32 = arith.constant 8 : i32
    %0 = arith.subi %arg0, %c8_i32 : i32
    %c0_i32 = arith.constant 0 : i32
    %1 = arith.maxsi %0, %c0_i32 : i32
    %c0_i32_0 = arith.constant 0 : i32
    %c0_i32_1 = arith.constant 0 : i32
    %c0_i32_2 = arith.constant 0 : i32
    return %1, %c0_i32_0, %c0_i32_1 : i32, i32, i32
  }
  func.func @transform_3(%arg0: i32, %arg1: memref<8xi32, #tpu.memory_space<smem>>) -> (i32, i32, i32) {
    %c0_i32 = arith.constant 0 : i32
    %c0_i32_0 = arith.constant 0 : i32
    %c0_i32_1 = arith.constant 0 : i32
    %c0_i32_2 = arith.constant 0 : i32
    return %c0_i32, %c0_i32_0, %c0_i32_1 : i32, i32, i32
  }
  func.func @transform_4(%arg0: i32, %arg1: memref<8xi32, #tpu.memory_space<smem>>) -> (i32, i32, i32) {
    %c0_i32 = arith.constant 0 : i32
    %c0_i32_0 = arith.constant 0 : i32
    %c0_i32_1 = arith.constant 0 : i32
    %c0_i32_2 = arith.constant 0 : i32
    return %c0_i32, %c0_i32_0, %c0_i32_1 : i32, i32, i32
  }
  func.func @transform_5(%arg0: i32, %arg1: memref<8xi32, #tpu.memory_space<smem>>) -> (i32, i32, i32) {
    %c0_i32 = arith.constant 0 : i32
    %c0_i32_0 = arith.constant 0 : i32
    %c0_i32_1 = arith.constant 0 : i32
    %c0_i32_2 = arith.constant 0 : i32
    return %c0_i32, %c0_i32_0, %c0_i32_1 : i32, i32, i32
  }
  func.func @transform_6(%arg0: i32, %arg1: memref<8xi32, #tpu.memory_space<smem>>) -> (i32, i32, i32) {
    %c0_i32 = arith.constant 0 : i32
    %c0_i32_0 = arith.constant 0 : i32
    %c0_i32_1 = arith.constant 0 : i32
    %c0_i32_2 = arith.constant 0 : i32
    return %c0_i32, %c0_i32_0, %c0_i32_1 : i32, i32, i32
  }
  func.func @transform_7(%arg0: i32, %arg1: memref<8xi32, #tpu.memory_space<smem>>) -> (i32, i32, i32) {
    %c0_i32 = arith.constant 0 : i32
    %c0_i32_0 = arith.constant 0 : i32
    %c0_i32_1 = arith.constant 0 : i32
    %c0_i32_2 = arith.constant 0 : i32
    return %c0_i32, %c0_i32_0, %c0_i32_1 : i32, i32, i32
  }
  func.func @transform_8(%arg0: i32, %arg1: memref<8xi32, #tpu.memory_space<smem>>) -> (i32, i32, i32) {
    %c0_i32 = arith.constant 0 : i32
    %c0_i32_0 = arith.constant 0 : i32
    %c0_i32_1 = arith.constant 0 : i32
    %c0_i32_2 = arith.constant 0 : i32
    return %c0_i32, %c0_i32_0, %c0_i32_1 : i32, i32, i32
  }
  func.func @transform_9(%arg0: i32, %arg1: memref<8xi32, #tpu.memory_space<smem>>) -> (i32, i32) {
    %c0_i32 = arith.constant 0 : i32
    %c0_i32_0 = arith.constant 0 : i32
    %c0_i32_1 = arith.constant 0 : i32
    return %c0_i32, %c0_i32_0 : i32, i32
  }
  func.func @transform_10(%arg0: i32, %arg1: memref<8xi32, #tpu.memory_space<smem>>) -> (i32, i32) {
    %c0_i32 = arith.constant 0 : i32
    %c0_i32_0 = arith.constant 0 : i32
    %c0_i32_1 = arith.constant 0 : i32
    return %c0_i32, %c0_i32_0 : i32, i32
  }
  func.func @transform_11(%arg0: i32, %arg1: memref<8xi32, #tpu.memory_space<smem>>) -> (i32, i32) {
    %c0_i32 = arith.constant 0 : i32
    %c0_i32_0 = arith.constant 0 : i32
    %c0_i32_1 = arith.constant 0 : i32
    return %c0_i32, %c0_i32_0 : i32, i32
  }
  func.func @transform_12(%arg0: i32, %arg1: memref<8xi32, #tpu.memory_space<smem>>) -> (i32, i32, i32) {
    %c8_i32 = arith.constant 8 : i32
    %0 = arith.subi %arg0, %c8_i32 : i32
    %c0_i32 = arith.constant 0 : i32
    %1 = arith.maxsi %0, %c0_i32 : i32
    %c0_i32_0 = arith.constant 0 : i32
    %c0_i32_1 = arith.constant 0 : i32
    %c0_i32_2 = arith.constant 0 : i32
    return %1, %c0_i32_0, %c0_i32_1 : i32, i32, i32
  }
}

</mosaic_0001>

<bundles_post_ra>
// kernel: forward.1
= control target key start
LH: loop header
LB: loop body
LE: loop exit
PB: predicated region body
PF: predicated region fallthrough
CT: control target
= control target key end

     0   :  { %s5357_s0 = inlined_call_operand.vmem [shape: s32[8], index: 0, kind: input, shape index: {}]   ;;  %s5358_s1 = inlined_call_operand.vmem [shape: f32[8,8,128], index: 1, kind: input, shape index: {}]   ;;  %s5359_s2 = inlined_call_operand.vmem [shape: f32[8,128], index: 2, kind: input, shape index: {}]   ;;  %s5360_s3 = inlined_call_operand.vmem [shape: f32[7,8,128], index: 3, kind: input, shape index: {}]   ;;  %s5361_s4 = inlined_call_operand.vmem [shape: bf16[2,128,512], index: 4, kind: input, shape index: {}]   ;;  %s5362_s5 = inlined_call_operand.vmem [shape: bf16[2,128,512], index: 5, kind: input, shape index: {}]   ;;  %s5363_s6 = inlined_call_operand.vmem [shape: f32[2,1,512], index: 6, kind: input, shape index: {}]   ;;  %s5364_s7 = inlined_call_operand.hbm [shape: bf16[2,128,512], index: 7, kind: input, shape index: {}]   ;;  %s5365_s8 = inlined_call_operand.hbm [shape: bf16[2,128,512], index: 8, kind: input, shape index: {}]   ;;  %s5366_s9 = inlined_call_operand.vmem [shape: f32[2,1,512], index: 9, kind: input, shape index: {}]   ;;  %s5367_s10 = inlined_call_operand.vmem [shape: bf16[128,128], index: 10, kind: input, shape index: {}]   ;;  %s5368_s11 = inlined_call_operand.vmem [shape: f32[1,128], index: 11, kind: input, shape index: {}]   ;;  %s5369_s12 = inlined_call_operand.vmem [shape: bf16[128,128], index: 12, kind: input, shape index: {}]   ;;  %s5370_s13 = inlined_call_operand.vmem [shape: f32[7,8,128], index: 13, kind: output, shape index: {}]  }
   0x1   :  { %s18_s27 = sshll.u32 %s5357_s0, 4  ;;  %s19_s27 = int_to_ptr.vmem [resolvable:$true] %s18_s27 }
   0x2   :  { %s4574_s28 = scalar_lea.vmem %s19_s27, 16  ;;  %p4579_p1 = scmp.lt.s32.totalorder %s19_s27, %s19_s27 }
   0x3   :  { %p4575_p0 = scmp.ne.s32.totalorder %s19_s27, %s4574_s28  ;;  %p4580_p2 = scmp.lt.s32.totalorder %s4574_s28, %s4574_s28 }
   0x5   :  { %p4581_p3 = por %p4580_p2, %p4579_p1 }
   0x7   :  { %p4582_p4 = pnand %p4581_p3, %p4575_p0 }
   0x9   :  { %4585 = shalt.err (!%p4582_p4)  }
   0xa   :  { %s4660_s29 = smov [#allocation6]  }
   0xb   :  { %21 = dma.vmem_to_smem %s19_s27, 16, %s4660_s29, [#allocation5] }
   0xc   :  { %4646 = dma.done.wait [#allocation5], 16 }
   0xd   :  { %4647 = vsyncadd [#allocation5], 4294967280 }
   0xe   :  { %23 = sfence }
   0xf   :  { %24 = vsyncpa [#allocation8], 0 }
  0x10   :  { %25 = vsyncpa [#allocation10], 0  ;;  %s4746_s30 = smov 0  }
  0x11 LB: > { %s4752_s0 = sadd.s32 4294967295, %s4658_s30   ;;  %p3024_p5 = scmp.ge.s32.totalorder %s4658_s30, 1  ;;  %s4658_s30 = sphi %s4746_s30, %s31_s30  }
  0x12   : > { %p340_p6 = scmp.lt.s32.totalorder %s4658_s30, 16  ;;  %s4661_s14 = smov [#allocation7]  }
  0x13   : > { %s364_s15 = sshll.u32 %s4661_s14, 4  ;;  %p5371_p9 = scmp.eq.s32.totalorder %s4752_s0, 0  ;;  %s365_s15 = int_to_ptr.vmem [resolvable:$true] %s364_s15 }
  0x14   : > { %p4757_p8 = pnand %p3024_p5, %p340_p6  ;;  %s4662_s17 = smov [#allocation9]  }
  0x15   : > { %s377_s18 = sshll.u32 %s4662_s17, 4  ;;  %s4586_s22 = scalar_lea.hbm %s5364_s7, 8192  ;;  %s4770_s18 = int_to_ptr.vmem [resolvable:$true] %s377_s18 }
  0x16   : > { %s5373_s16 = scalar_select %p4757_p8, 1, 0 }
  0x17   : > { %p4086_p10 = pneg %p4757_p8  ;;  %p4587_p12 = scmp.ne.s32.totalorder %s5364_s7, %s4586_s22 }
  0x18   : > { %p4593_p2 = scmp.lt.u32.totalorder %s4586_s22, %s5364_s7 }
  0x19   : > { %p4766_p11 = pnand %p5371_p9, %p4086_p10 }
  0x1b   : > { %p4588_p13 = pneg %p4766_p11 }
  0x1d   : > { %p4589_p0 = pnand %p4588_p13, %p4587_p12 }
  0x1f   : > { %p4590_p1 = pneg %p4589_p0 }
  0x21   : > { %p4595_p3 = pnand %p4593_p2, %p4590_p1 }
  0x23   : > { %4598 = shalt.err (!%p4595_p3)
}
  0x24   : > { %s4599_s27 = scalar_lea.vmem %s365_s15, 8192  ;;  %p4607_p10 = scmp.lt.s32.totalorder %s365_s15, %s365_s15 }
  0x25   : > { %p4600_p4 = scmp.ne.s32.totalorder %s365_s15, %s4599_s27  ;;  %p4608_p7 = scmp.lt.s32.totalorder %s4599_s27, %s4599_s27 }
  0x27   : > { %p4602_p5 = pnand %p4600_p4, %p4588_p13  ;;  %p4609_p9 = por %p4608_p7, %p4607_p10 }
  0x29   : > { %p4603_p6 = pneg %p4602_p5 }
  0x2b   : > { %p4610_p8 = pnand %p4609_p9, %p4603_p6 }
  0x2d   : > { %4613 = shalt.err (!%p4610_p8)
}
  0x2e   : > { %s4663_s28 = smov 256   ;;  %s4664_s29 = smov 16  }
  0x2f   : > { %4089 = dma.hbm_to_vmem [thread:$0]  (!%p4766_p11), %s5364_s7, 8192, %s365_s15, [#allocation8], %s4663_s28, %s4663_s28, %s4664_s29  }
  0x30   : > { %s4614_s22 = scalar_lea.hbm %s5365_s8, 8192 }
  0x31   : > { %p4615_p12 = scmp.ne.s32.totalorder %s5365_s8, %s4614_s22  ;;  %p4621_p9 = scmp.lt.u32.totalorder %s4614_s22, %s5365_s8 }
  0x33   : > { %p4617_p7 = pnand %p4615_p12, %p4588_p13 }
  0x35   : > { %p4618_p8 = pneg %p4617_p7 }
  0x37   : > { %p4623_p0 = pnand %p4621_p9, %p4618_p8 }
  0x39   : > { %4626 = shalt.err (!%p4623_p0)
}
  0x3a   : > { %s4627_s15 = scalar_lea.vmem %s4770_s18, 8192  ;;  %p4635_p4 = scmp.lt.s32.totalorder %s4770_s18, %s4770_s18 }
  0x3b   : > { %p4628_p1 = scmp.ne.s32.totalorder %s4770_s18, %s4627_s15  ;;  %p4636_p5 = scmp.lt.s32.totalorder %s4627_s15, %s4627_s15 }
  0x3d   : > { %p4630_p2 = pnand %p4628_p1, %p4588_p13  ;;  %p4637_p6 = por %p4636_p5, %p4635_p4 }
  0x3f   : > { %p4631_p3 = pneg %p4630_p2 }
  0x41   : > { %p4638_p10 = pnand %p4637_p6, %p4631_p3 }
  0x43   : > { %4641 = shalt.err (!%p4638_p10)
}
  0x44   : > { %4092 = dma.hbm_to_vmem [thread:$0]  (!%p4766_p11), %s5365_s8, 8192, %s4770_s18, [#allocation10], %s4663_s28, %s4663_s28, %s4664_s29  }
  0x45   : > { %p5375_p12 = scmp.ne.s32.totalorder %s5373_s16, 0 }
  0x46   : > { %p5376_p7 = scmp.eq.s32.totalorder (!%p5375_p12), %s4752_s0, 0 }
  0x47   : > { %429 = sbr.rel (%p5375_p12) target bundleno = 2148 (0x864), region = 68 }
  0x4e   : > { %4649 = dma.done.wait (%p5376_p7), [#allocation8], 8192   ;;  %p5377_p13 = pmov %p5376_p7 }
  0x4f   : > { %p5378_p8 = pmov %p5376_p7 }
  0x50   : > { %4651 = vsyncadd (%p5377_p13), [#allocation8], 4294959104 }
  0x51   : > { %4653 = dma.done.wait (%p5378_p8), [#allocation10], 8192   ;;  %p5379_p9 = pmov %p5376_p7 }
  0x52   : > { %p485_p0 = scmp.lt.s32.totalorder %s4752_s0, 7  ;;  %s3035_s18 = sadd.s32 4294967288, %s4752_s0 }
  0x53   : > { %4655 = vsyncadd (%p5379_p9), [#allocation10], 4294959104  ;;  %p494_p11 = scmp.gt.s32.totalorder %s3035_s18, 0  ;;  %p3036_p1 = scmp.lt.s32.totalorder %s3035_s18, 6 }
  0x54   : > { %s486_s16 = scalar_select %p485_p0, %s4752_s0, 7 }
  0x55   : > { %s5382_s18 = smov (!%p494_p11, %s3035_s18), 0  ;;  %p5380_p2 = scmp.ne.s32.totalorder %s4752_s0, 0 }
  0x56   : > { %s5384_s16 = smov (!%p485_p0, %s486_s16), 7  ;;  %s5386_s18 = smov (!%p3036_p1, %s5382_s18), 6 }
  0x57   : > { %s3034_s19 = sshll.u32 %s5384_s16, 3  ;;  %s3041_s20 = sshll.u32 %s5386_s18, 3  ;;  %v4665_v0 = vmov (!%p5380_p2), 0.0  }
  0x58   : > { %s4835_s17 = scalar_lea.vmem %s5358_s1, %s3034_s19  ;;  %s4840_s23 = scalar_lea.vmem %s5360_s3, %s3041_s20  ;;  %518 = vst [vmem:[#allocation2] sm:$0xff] (!%p5380_p2), %v4665_v0  ;;  %519 = vst [vmem:[#allocation2 + $0x8] sm:$0xff] (!%p5380_p2), %v4665_v0 }
  0x59   : > { %s4845_s26 = scalar_lea.vmem %s5370_s13, %s3041_s20  ;;  %517 = sbr.rel (%p5380_p2) target bundleno = 96 (0x60), region = 80  ;;  %520 = vst [vmem:[#allocation3] sm:$0xff] (!%p5380_p2), %v4665_v0  ;;  %521 = vst [vmem:[#allocation3 + $0x8] sm:$0xff] (!%p5380_p2), %v4665_v0 }
  0x60 PF: > { %p3050_p3 = scmp.ge.s32.totalorder %s4752_s0, 8 }
  0x61   : > { %v4118_v1 = vld [vmem:[%s5362_s5 + $0x4] ss:$16 sps:$4 sm:$0xff] (!%p3050_p3)   ;;  %v4120_v2 = vld [vmem:[%s5362_s5 + $0xc] ss:$16 sps:$4 sm:$0xff] (!%p3050_p3)   ;;  %v4666_v3 = vmov (!%p3050_p3), 0.0  }
  0x62   : > { %525 = sbr.rel (%p3050_p3) target bundleno = 680 (0x2a8), region = 84  ;;  %785 = vmatprep.mubr.f32.mxu0 (!%p3050_p3), %v4666_v3  ;;  %856 = vmatprep.mubr.f32.mxu1 (!%p3050_p3), %v4666_v3  ;;  %v4122_v4 = vld [vmem:[%s5362_s5] ss:$16 sps:$4 sm:$0xff] (!%p3050_p3)   ;;  %v4123_v5 = vld [vmem:[%s5362_s5 + $0x8] ss:$16 sps:$4 sm:$0xff] (!%p3050_p3)  }
  0x63   : > { %3271 = vmatprep.subr.bf16.mxu0 (!%p3050_p3), %v4118_v1  ;;  %3303 = vmatprep.subr.bf16.mxu1 (!%p3050_p3), %v4120_v2  ;;  %v4124_v6 = vld [vmem:[%s5362_s5 + $0x24] ss:$16 sps:$4 sm:$0xff] (!%p3050_p3)   ;;  %v4126_v7 = vld [vmem:[%s5362_s5 + $0x2c] ss:$16 sps:$4 sm:$0xff] (!%p3050_p3)   ;;  %v4128_v8 = vld [vmem:[%s5362_s5 + $0x20] ss:$16 sps:$4 sm:$0xff] (!%p3050_p3)  }
  0x64   : > { %3273 = vmatpush1.bf16.msra.mxu0 (!%p3050_p3), %v4122_v4  ;;  %3305 = vmatpush1.bf16.msra.mxu1 (!%p3050_p3), %v4123_v5  ;;  %v4129_v9 = vld [vmem:[%s5362_s5 + $0x28] ss:$16 sps:$4 sm:$0xff] (!%p3050_p3)   ;;  %v4130_v10 = vld [vmem:[%s5362_s5 + $0x44] ss:$16 sps:$4 sm:$0xff] (!%p3050_p3)   ;;  %v4132_v11 = vld [vmem:[%s5362_s5 + $0x4c] ss:$16 sps:$4 sm:$0xff] (!%p3050_p3)  }
  0x65   : > { %3275 = vmatprep.subr.bf16.mxu0 (!%p3050_p3), %v4124_v6  ;;  %3307 = vmatprep.subr.bf16.mxu1 (!%p3050_p3), %v4126_v7  ;;  %v4134_v12 = vld [vmem:[%s5362_s5 + $0x40] ss:$16 sps:$4 sm:$0xff] (!%p3050_p3)   ;;  %v4135_v13 = vld [vmem:[%s5362_s5 + $0x48] ss:$16 sps:$4 sm:$0xff] (!%p3050_p3)   ;;  %v4136_v14 = vld [vmem:[%s5362_s5 + $0x64] ss:$16 sps:$4 sm:$0xff] (!%p3050_p3)  }
  0x66   : > { %v4138_v15 = vld [vmem:[%s5362_s5 + $0x6c] ss:$16 sps:$4 sm:$0xff] (!%p3050_p3)   ;;  %v4140_v16 = vld [vmem:[%s5362_s5 + $0x60] ss:$16 sps:$4 sm:$0xff] (!%p3050_p3)   ;;  %v4141_v17 = vld [vmem:[%s5362_s5 + $0x68] ss:$16 sps:$4 sm:$0xff] (!%p3050_p3)  }
  0x67   : > { %v4142_v18 = vld [vmem:[%s5362_s5 + $0x84] ss:$16 sps:$4 sm:$0xff] (!%p3050_p3)   ;;  %v4144_v19 = vld [vmem:[%s5362_s5 + $0x8c] ss:$16 sps:$4 sm:$0xff] (!%p3050_p3)   ;;  %v4146_v20 = vld [vmem:[%s5362_s5 + $0x80] ss:$16 sps:$4 sm:$0xff] (!%p3050_p3)  }
  0x68   : > { %3277 = vmatpush1.bf16.msra.mxu0 (!%p3050_p3), %v4128_v8  ;;  %3309 = vmatpush1.bf16.msra.mxu1 (!%p3050_p3), %v4129_v9  ;;  %v4147_v21 = vld [vmem:[%s5362_s5 + $0x88] ss:$16 sps:$4 sm:$0xff] (!%p3050_p3)   ;;  %v4148_v22 = vld [vmem:[%s5362_s5 + $0xa4] ss:$16 sps:$4 sm:$0xff] (!%p3050_p3)   ;;  %v4150_v23 = vld [vmem:[%s5362_s5 + $0xac] ss:$16 sps:$4 sm:$0xff] (!%p3050_p3)  }
  0x69   : > { %3279 = vmatprep.subr.bf16.mxu0 %v4130_v10  ;;  %3311 = vmatprep.subr.bf16.mxu1 %v4132_v11  ;;  %v4152_v24 = vld [vmem:[%s5362_s5 + $0xa0] ss:$16 sps:$4 sm:$0xff]   ;;  %v4153_v25 = vld [vmem:[%s5362_s5 + $0xa8] ss:$16 sps:$4 sm:$0xff]   ;;  %v4154_v26 = vld [vmem:[%s5362_s5 + $0xc4] ss:$16 sps:$4 sm:$0xff]  }
  0x6a   : > { %v4156_v27 = vld [vmem:[%s5362_s5 + $0xcc] ss:$16 sps:$4 sm:$0xff]   ;;  %v4158_v28 = vld [vmem:[%s5362_s5 + $0xc0] ss:$16 sps:$4 sm:$0xff]   ;;  %v4159_v29 = vld [vmem:[%s5362_s5 + $0xc8] ss:$16 sps:$4 sm:$0xff]  }
  0x6b   : > { %v4160_v30 = vld [vmem:[%s5362_s5 + $0xe4] ss:$16 sps:$4 sm:$0xff]   ;;  %v4162_v31 = vld [vmem:[%s5362_s5 + $0xec] ss:$16 sps:$4 sm:$0xff]   ;;  %v4164_v32 = vld [vmem:[%s5362_s5 + $0xe0] ss:$16 sps:$4 sm:$0xff]  }
  0x6c   : > { %3281 = vmatpush1.bf16.msra.mxu0 %v4134_v12  ;;  %3313 = vmatpush1.bf16.msra.mxu1 %v4135_v13  ;;  %v4165_v33 = vld [vmem:[%s5362_s5 + $0xe8] ss:$16 sps:$4 sm:$0xff]   ;;  %v4166_v34 = vld [vmem:[%s5361_s4 + $0x4] ss:$16 sps:$4 sm:$0xff]   ;;  %v4169_v35 = vld [vmem:[%s5361_s4 + $0xc] ss:$16 sps:$4 sm:$0xff]  }
  0x6d   : > { %3283 = vmatprep.subr.bf16.mxu0 %v4136_v14  ;;  %3315 = vmatprep.subr.bf16.mxu1 %v4138_v15  ;;  %v4168_v36 = vld [vmem:[%s5361_s4] ss:$16 sps:$4 sm:$0xff]   ;;  %v4171_v37 = vld [vmem:[%s5361_s4 + $0x8] ss:$16 sps:$4 sm:$0xff]   ;;  %v4172_v39 = vld [vmem:[%s5361_s4 + $0x24] ss:$16 sps:$4 sm:$0xff]  }
  0x6e   : > { %v527_v38 = vld [vmem:[#allocation2] sm:$0xff]  ;;  %v4175_v40 = vld [vmem:[%s5361_s4 + $0x2c] ss:$16 sps:$4 sm:$0xff]   ;;  %v4177_v42 = vld [vmem:[%s5361_s4 + $0x28] ss:$16 sps:$4 sm:$0xff]  }
  0x6f   : > { %v4174_v41 = vld [vmem:[%s5361_s4 + $0x20] ss:$16 sps:$4 sm:$0xff]   ;;  %v4178_v43 = vld [vmem:[%s5361_s4 + $0x44] ss:$16 sps:$4 sm:$0xff]   ;;  %v4181_v44 = vld [vmem:[%s5361_s4 + $0x4c] ss:$16 sps:$4 sm:$0xff]  }
  0x70   : > { %3285 = vmatpush1.bf16.msra.mxu0 %v4140_v16  ;;  %3317 = vmatpush1.bf16.msra.mxu1 %v4141_v17  ;;  %v4180_v45 = vld [vmem:[%s5361_s4 + $0x40] ss:$16 sps:$4 sm:$0xff]   ;;  %v4183_v46 = vld [vmem:[%s5361_s4 + $0x48] ss:$16 sps:$4 sm:$0xff]   ;;  %v4184_v47 = vld [vmem:[%s5361_s4 + $0x64] ss:$16 sps:$4 sm:$0xff]  }
  0x71   : > { %3287 = vmatprep.subr.bf16.mxu0 %v4142_v18  ;;  %3319 = vmatprep.subr.bf16.mxu1 %v4144_v19  ;;  %v4187_v48 = vld [vmem:[%s5361_s4 + $0x6c] ss:$16 sps:$4 sm:$0xff]   ;;  %v4186_v49 = vld [vmem:[%s5361_s4 + $0x60] ss:$16 sps:$4 sm:$0xff]   ;;  %v4189_v50 = vld [vmem:[%s5361_s4 + $0x68] ss:$16 sps:$4 sm:$0xff]  }
  0x72   : > { %v4190_v51 = vld [vmem:[%s5361_s4 + $0x84] ss:$16 sps:$4 sm:$0xff]   ;;  %v4193_v52 = vld [vmem:[%s5361_s4 + $0x8c] ss:$16 sps:$4 sm:$0xff]   ;;  %v4192_v53 = vld [vmem:[%s5361_s4 + $0x80] ss:$16 sps:$4 sm:$0xff]  }
  0x73   : > { %v4195_v54 = vld [vmem:[%s5361_s4 + $0x88] ss:$16 sps:$4 sm:$0xff]   ;;  %v4196_v55 = vld [vmem:[%s5361_s4 + $0xa4] ss:$16 sps:$4 sm:$0xff]   ;;  %v4199_v56 = vld [vmem:[%s5361_s4 + $0xac] ss:$16 sps:$4 sm:$0xff]  }
  0x74   : > { %3289 = vmatpush1.bf16.msra.mxu0 %v4146_v20  ;;  %3321 = vmatpush1.bf16.msra.mxu1 %v4147_v21  ;;  %v4198_v57 = vld [vmem:[%s5361_s4 + $0xa0] ss:$16 sps:$4 sm:$0xff]   ;;  %v4201_v58 = vld [vmem:[%s5361_s4 + $0xa8] ss:$16 sps:$4 sm:$0xff]   ;;  %v4202_v59 = vld [vmem:[%s5361_s4 + $0xc4] ss:$16 sps:$4 sm:$0xff]  }
  0x75   : > { %3291 = vmatprep.subr.bf16.mxu0 %v4148_v22  ;;  %3323 = vmatprep.subr.bf16.mxu1 %v4150_v23  ;;  %v4205_v60 = vld [vmem:[%s5361_s4 + $0xcc] ss:$16 sps:$4 sm:$0xff]   ;;  %v4204_v61 = vld [vmem:[%s5361_s4 + $0xc0] ss:$16 sps:$4 sm:$0xff]   ;;  %v4207_v62 = vld [vmem:[%s5361_s4 + $0xc8] ss:$16 sps:$4 sm:$0xff]  }
  0x76   : > { %v4208_v63 = vld [vmem:[%s5361_s4 + $0xe4] ss:$16 sps:$4 sm:$0xff]   ;;  %v4211_v0 = vld [vmem:[%s5361_s4 + $0xec] ss:$16 sps:$4 sm:$0xff]   ;;  %v4210_v1 = vld [vmem:[%s5361_s4 + $0xe0] ss:$16 sps:$4 sm:$0xff]  }
  0x77   : > { %v4213_v2 = vld [vmem:[%s5361_s4 + $0xe8] ss:$16 sps:$4 sm:$0xff]   ;;  %v4214_v4 = vld [vmem:[%s5362_s5 + $0x104] ss:$16 sps:$4 sm:$0xff]   ;;  %v4217_v5 = vld [vmem:[%s5362_s5 + $0x10c] ss:$16 sps:$4 sm:$0xff]  }
  0x78   : > { %3293 = vmatpush1.bf16.msra.mxu0 %v4152_v24  ;;  %3325 = vmatpush1.bf16.msra.mxu1 %v4153_v25  ;;  %v526_v6 = vld [vmem:[%s4835_s17] sm:$0xff]  ;;  %v4219_v8 = vld [vmem:[%s5362_s5 + $0x108] ss:$16 sps:$4 sm:$0xff]   ;;  %v4223_v10 = vld [vmem:[%s5362_s5 + $0x12c] ss:$16 sps:$4 sm:$0xff]  }
  0x79   : > { %3295 = vmatprep.subr.bf16.mxu0 %v4154_v26  ;;  %3327 = vmatprep.subr.bf16.mxu1 %v4156_v27  ;;  %v4216_v7 = vld [vmem:[%s5362_s5 + $0x100] ss:$16 sps:$4 sm:$0xff]   ;;  %v4220_v9 = vld [vmem:[%s5362_s5 + $0x124] ss:$16 sps:$4 sm:$0xff]   ;;  %v4225_v12 = vld [vmem:[%s5362_s5 + $0x128] ss:$16 sps:$4 sm:$0xff]  }
  0x7a   : > { %v4222_v11 = vld [vmem:[%s5362_s5 + $0x120] ss:$16 sps:$4 sm:$0xff]   ;;  %v4226_v13 = vld [vmem:[%s5362_s5 + $0x144] ss:$16 sps:$4 sm:$0xff]   ;;  %v4229_v14 = vld [vmem:[%s5362_s5 + $0x14c] ss:$16 sps:$4 sm:$0xff]  }
  0x7b   : > { %v4228_v15 = vld [vmem:[%s5362_s5 + $0x140] ss:$16 sps:$4 sm:$0xff]   ;;  %v4231_v16 = vld [vmem:[%s5362_s5 + $0x148] ss:$16 sps:$4 sm:$0xff]   ;;  %v4232_v17 = vld [vmem:[%s5362_s5 + $0x164] ss:$16 sps:$4 sm:$0xff]  }
  0x7c   : > { %3297 = vmatpush1.bf16.msra.mxu0 %v4158_v28  ;;  %3329 = vmatpush1.bf16.msra.mxu1 %v4159_v29  ;;  %v4235_v18 = vld [vmem:[%s5362_s5 + $0x16c] ss:$16 sps:$4 sm:$0xff]   ;;  %v4234_v19 = vld [vmem:[%s5362_s5 + $0x160] ss:$16 sps:$4 sm:$0xff]   ;;  %v4237_v20 = vld [vmem:[%s5362_s5 + $0x168] ss:$16 sps:$4 sm:$0xff]  }
  0x7d   : > { %3299 = vmatprep.subr.bf16.mxu0 %v4160_v30  ;;  %3331 = vmatprep.subr.bf16.mxu1 %v4162_v31  ;;  %v4238_v21 = vld [vmem:[%s5362_s5 + $0x184] ss:$16 sps:$4 sm:$0xff]   ;;  %v4241_v22 = vld [vmem:[%s5362_s5 + $0x18c] ss:$16 sps:$4 sm:$0xff]   ;;  %v4240_v23 = vld [vmem:[%s5362_s5 + $0x180] ss:$16 sps:$4 sm:$0xff]  }
  0x7e   : > { %v4243_v24 = vld [vmem:[%s5362_s5 + $0x188] ss:$16 sps:$4 sm:$0xff]   ;;  %v4244_v25 = vld [vmem:[%s5362_s5 + $0x1a4] ss:$16 sps:$4 sm:$0xff]   ;;  %v4247_v26 = vld [vmem:[%s5362_s5 + $0x1ac] ss:$16 sps:$4 sm:$0xff]  }
  0x7f   : > { %v4246_v27 = vld [vmem:[%s5362_s5 + $0x1a0] ss:$16 sps:$4 sm:$0xff]   ;;  %v4249_v28 = vld [vmem:[%s5362_s5 + $0x1a8] ss:$16 sps:$4 sm:$0xff]   ;;  %v4250_v29 = vld [vmem:[%s5362_s5 + $0x1c4] ss:$16 sps:$4 sm:$0xff]  }
  0x80   : > { %3301 = vmatpush1.bf16.msra.mxu0 %v4164_v32  ;;  %3333 = vmatpush1.bf16.msra.mxu1 %v4165_v33  ;;  %v4253_v30 = vld [vmem:[%s5362_s5 + $0x1cc] ss:$16 sps:$4 sm:$0xff]   ;;  %v4252_v31 = vld [vmem:[%s5362_s5 + $0x1c0] ss:$16 sps:$4 sm:$0xff]   ;;  %v4255_v32 = vld [vmem:[%s5362_s5 + $0x1c8] ss:$16 sps:$4 sm:$0xff]  }
  0x81   : > { %3335 = vmatprep.subr.bf16.mxu0 %v4166_v34  ;;  %3367 = vmatprep.subr.bf16.mxu1 %v4169_v35  ;;  %v4256_v33 = vld [vmem:[%s5362_s5 + $0x1e4] ss:$16 sps:$4 sm:$0xff]   ;;  %v4259_v34 = vld [vmem:[%s5362_s5 + $0x1ec] ss:$16 sps:$4 sm:$0xff]   ;;  %v4258_v35 = vld [vmem:[%s5362_s5 + $0x1e0] ss:$16 sps:$4 sm:$0xff]  }
  0x83   : > { %786 = vmatmul.mubr.f32.vlgmr.msra.gmra.mrb[0].mxu0 %v527_v38  ;;  %857 = vmatmul.mubr.f32.vlgmr.msra.gmra.mrb[0].mxu1 %v527_v38  ;;  %v4265_v38 = vld [vmem:[%s5361_s4 + $0x10c] ss:$16 sps:$4 sm:$0xff]  }
  0x84   : > { %3337 = vmatpush1.bf16.msra.mxu0 %v4168_v36  ;;  %3369 = vmatpush1.bf16.msra.mxu1 %v4171_v37  ;;  %v4261_v36 = vld [vmem:[%s5362_s5 + $0x1e8] ss:$16 sps:$4 sm:$0xff]   ;;  %v4262_v37 = vld [vmem:[%s5361_s4 + $0x104] ss:$16 sps:$4 sm:$0xff]  }
  0x85   : > { %3339 = vmatprep.subr.bf16.mxu0 %v4172_v39  ;;  %3371 = vmatprep.subr.bf16.mxu1 %v4175_v40  ;;  %v4264_v39 = vld [vmem:[%s5361_s4 + $0x100] ss:$16 sps:$4 sm:$0xff]   ;;  %v4267_v40 = vld [vmem:[%s5361_s4 + $0x108] ss:$16 sps:$4 sm:$0xff]  }
  0x86   : > { %927 = vmatprep.mubr.f32.mxu0 %v4666_v3  ;;  %998 = vmatprep.mubr.f32.mxu1 %v4666_v3 }
  0x88   : > { %3341 = vmatpush1.bf16.msra.mxu0 %v4174_v41  ;;  %3373 = vmatpush1.bf16.msra.mxu1 %v4177_v42  ;;  %v1058_v41 = vld [vmem:[#allocation2 + $0x8] sm:$0xff]  ;;  %v4268_v42 = vld [vmem:[%s5361_s4 + $0x124] ss:$16 sps:$4 sm:$0xff]  }
  0x89   : > { %3343 = vmatprep.subr.bf16.mxu0 %v4178_v43  ;;  %3375 = vmatprep.subr.bf16.mxu1 %v4181_v44  ;;  %v4271_v43 = vld [vmem:[%s5361_s4 + $0x12c] ss:$16 sps:$4 sm:$0xff]   ;;  %v4270_v44 = vld [vmem:[%s5361_s4 + $0x120] ss:$16 sps:$4 sm:$0xff]  }
  0x8c   : > { %3345 = vmatpush1.bf16.msra.mxu0 %v4180_v45  ;;  %3377 = vmatpush1.bf16.msra.mxu1 %v4183_v46  ;;  %v4273_v45 = vld [vmem:[%s5361_s4 + $0x128] ss:$16 sps:$4 sm:$0xff]   ;;  %v4274_v46 = vld [vmem:[%s5361_s4 + $0x144] ss:$16 sps:$4 sm:$0xff]  }
  0x8d   : > { %3347 = vmatprep.subr.bf16.mxu0 %v4184_v47  ;;  %3379 = vmatprep.subr.bf16.mxu1 %v4187_v48  ;;  %v4277_v47 = vld [vmem:[%s5361_s4 + $0x14c] ss:$16 sps:$4 sm:$0xff]   ;;  %v4276_v48 = vld [vmem:[%s5361_s4 + $0x140] ss:$16 sps:$4 sm:$0xff]  }
  0x90   : > { %3349 = vmatpush1.bf16.msra.mxu0 %v4186_v49  ;;  %3381 = vmatpush1.bf16.msra.mxu1 %v4189_v50  ;;  %v4280_v49 = vld [vmem:[%s5361_s4 + $0x164] ss:$16 sps:$4 sm:$0xff]   ;;  %v4283_v50 = vld [vmem:[%s5361_s4 + $0x16c] ss:$16 sps:$4 sm:$0xff]  }
  0x91   : > { %3351 = vmatprep.subr.bf16.mxu0 %v4190_v51  ;;  %3383 = vmatprep.subr.bf16.mxu1 %v4193_v52  ;;  %v4282_v51 = vld [vmem:[%s5361_s4 + $0x160] ss:$16 sps:$4 sm:$0xff]   ;;  %v4285_v52 = vld [vmem:[%s5361_s4 + $0x168] ss:$16 sps:$4 sm:$0xff]  }
  0x94   : > { %3353 = vmatpush1.bf16.msra.mxu0 %v4192_v53  ;;  %3385 = vmatpush1.bf16.msra.mxu1 %v4195_v54  ;;  %v4286_v53 = vld [vmem:[%s5361_s4 + $0x184] ss:$16 sps:$4 sm:$0xff]   ;;  %v4289_v54 = vld [vmem:[%s5361_s4 + $0x18c] ss:$16 sps:$4 sm:$0xff]  }
  0x95   : > { %3355 = vmatprep.subr.bf16.mxu0 %v4196_v55  ;;  %3387 = vmatprep.subr.bf16.mxu1 %v4199_v56  ;;  %v4288_v55 = vld [vmem:[%s5361_s4 + $0x180] ss:$16 sps:$4 sm:$0xff]   ;;  %v4291_v56 = vld [vmem:[%s5361_s4 + $0x188] ss:$16 sps:$4 sm:$0xff]  }
  0x98   : > { %3357 = vmatpush1.bf16.msra.mxu0 %v4198_v57  ;;  %3389 = vmatpush1.bf16.msra.mxu1 %v4201_v58  ;;  %v4292_v57 = vld [vmem:[%s5361_s4 + $0x1a4] ss:$16 sps:$4 sm:$0xff]   ;;  %v4294_v58 = vld [vmem:[%s5361_s4 + $0x1a0] ss:$16 sps:$4 sm:$0xff]  }
  0x99   : > { %3359 = vmatprep.subr.bf16.mxu0 %v4202_v59  ;;  %3391 = vmatprep.subr.bf16.mxu1 %v4205_v60  ;;  %v4295_v59 = vld [vmem:[%s5361_s4 + $0x1ac] ss:$16 sps:$4 sm:$0xff]   ;;  %v4297_v60 = vld [vmem:[%s5361_s4 + $0x1a8] ss:$16 sps:$4 sm:$0xff]  }
  0x9c   : > { %3361 = vmatpush1.bf16.msra.mxu0 %v4204_v61  ;;  %3393 = vmatpush1.bf16.msra.mxu1 %v4207_v62  ;;  %v4298_v61 = vld [vmem:[%s5361_s4 + $0x1c4] ss:$16 sps:$4 sm:$0xff]   ;;  %v4301_v62 = vld [vmem:[%s5361_s4 + $0x1cc] ss:$16 sps:$4 sm:$0xff]  }
  0x9d   : > { %3363 = vmatprep.subr.bf16.mxu0 %v4208_v63  ;;  %3395 = vmatprep.subr.bf16.mxu1 %v4211_v0  ;;  %v4300_v63 = vld [vmem:[%s5361_s4 + $0x1c0] ss:$16 sps:$4 sm:$0xff]   ;;  %v4303_v0 = vld [vmem:[%s5361_s4 + $0x1c8] ss:$16 sps:$4 sm:$0xff]  }
  0xa0   : > { %3365 = vmatpush1.bf16.msra.mxu0 %v4210_v1  ;;  %3397 = vmatpush1.bf16.msra.mxu1 %v4213_v2  ;;  %v4304_v1 = vld [vmem:[%s5361_s4 + $0x1e4] ss:$16 sps:$4 sm:$0xff]   ;;  %v4307_v2 = vld [vmem:[%s5361_s4 + $0x1ec] ss:$16 sps:$4 sm:$0xff]  }
  0xa1   : > { %3399 = vmatprep.subr.bf16.mxu0 %v4214_v4  ;;  %3431 = vmatprep.subr.bf16.mxu1 %v4217_v5  ;;  %v4306_v4 = vld [vmem:[%s5361_s4 + $0x1e0] ss:$16 sps:$4 sm:$0xff]   ;;  %v4309_v5 = vld [vmem:[%s5361_s4 + $0x1e8] ss:$16 sps:$4 sm:$0xff]  }
  0xa3   : > { %928 = vmatmul.mubr.f32.vlgmr.msra.gmra.mrb[0].mxu0 %v526_v6  ;;  %999 = vmatmul.mubr.f32.vlgmr.msra.gmra.mrb[0].mxu1 %v526_v6  ;;  %v1007_v6 = vlaneseq }
  0xa4   : > { %3401 = vmatpush1.bf16.msra.mxu0 %v4216_v7  ;;  %3433 = vmatpush1.bf16.msra.mxu1 %v4219_v8 }
  0xa5   : > { %3403 = vmatprep.subr.bf16.mxu0 %v4220_v9  ;;  %3435 = vmatprep.subr.bf16.mxu1 %v4223_v10  ;;  %v5243_v7 = vshrl.u32 %v1007_v6, 7  ;;  %v1005_v9 = vld [vmem:[%s5363_s6] sm:$0xf] }
  0xa6   : > { %1319 = vmatprep.mubr.f32.mxu0 %v4666_v3  ;;  %1390 = vmatprep.mubr.f32.mxu1 %v4666_v3 }
  0xa7   : > { %v1009_v8 = vsub.s32 0, %v5243_v7  ;;  %v1013_v10 = vsub.s32 1, %v5243_v7 }
  0xa8   : > { %3405 = vmatpush1.bf16.msra.mxu0 %v4222_v11  ;;  %3437 = vmatpush1.bf16.msra.mxu1 %v4225_v12 }
  0xa9   : > { %3407 = vmatprep.subr.bf16.mxu0 %v4226_v13  ;;  %3439 = vmatprep.subr.bf16.mxu1 %v4229_v14  ;;  %v1010_v11 = vrot.slane %v1005_v9, %v1009_v8  ;;  %v1014_v12 = vrot.slane %v1005_v9, %v1013_v10 }
  0xac   : > { %3409 = vmatpush1.bf16.msra.mxu0 %v4228_v15  ;;  %3441 = vmatpush1.bf16.msra.mxu1 %v4231_v16  ;;  %v1021_v15 = vsub.s32 3, %v5243_v7 }
  0xad   : > { %3411 = vmatprep.subr.bf16.mxu0 %v4232_v17  ;;  %3443 = vmatprep.subr.bf16.mxu1 %v4235_v18 }
  0xb0   : > { %3413 = vmatpush1.bf16.msra.mxu0 %v4234_v19  ;;  %3445 = vmatpush1.bf16.msra.mxu1 %v4237_v20 }
  0xb1   : > { %3415 = vmatprep.subr.bf16.mxu0 %v4238_v21  ;;  %3447 = vmatprep.subr.bf16.mxu1 %v4241_v22  ;;  %v1022_v22 = vrot.slane %v1005_v9, %v1021_v15 }
  0xb4   : > { %3417 = vmatpush1.bf16.msra.mxu0 %v4240_v23  ;;  %3449 = vmatpush1.bf16.msra.mxu1 %v4243_v24  ;;  %v1017_v23 = vsub.s32 2, %v5243_v7 }
  0xb5   : > { %3419 = vmatprep.subr.bf16.mxu0 %v4244_v25  ;;  %3451 = vmatprep.subr.bf16.mxu1 %v4247_v26 }
  0xb6   : > { %v1018_v25 = vrot.slane %v1005_v9, %v1017_v23 }
  0xb8   : > { %3421 = vmatpush1.bf16.msra.mxu0 %v4246_v27  ;;  %3453 = vmatpush1.bf16.msra.mxu1 %v4249_v28 }
  0xb9   : > { %3423 = vmatprep.subr.bf16.mxu0 %v4250_v29  ;;  %3455 = vmatprep.subr.bf16.mxu1 %v4253_v30 }
  0xbc   : > { %3425 = vmatpush1.bf16.msra.mxu0 %v4252_v31  ;;  %3457 = vmatpush1.bf16.msra.mxu1 %v4255_v32 }
  0xbd   : > { %3427 = vmatprep.subr.bf16.mxu0 %v4256_v33  ;;  %3459 = vmatprep.subr.bf16.mxu1 %v4259_v34  ;;  %v528_v34 = vld [vmem:[#allocation3] sm:$0xff] }
  0xc0   : > { %3429 = vmatpush1.bf16.msra.mxu0 %v4258_v35  ;;  %3461 = vmatpush1.bf16.msra.mxu1 %v4261_v36 }
  0xc1   : > { %3463 = vmatprep.subr.bf16.mxu0 %v4262_v37  ;;  %3495 = vmatprep.subr.bf16.mxu1 %v4265_v38 }
  0xc3   : > { %1320 = vmatmul.mubr.f32.vlgmr.msra.gmra.mrb[2].mxu0 %v1058_v41  ;;  %1391 = vmatmul.mubr.f32.vlgmr.msra.gmra.mrb[2].mxu1 %v1058_v41 }
  0xc4   : > { %3465 = vmatpush1.bf16.msra.mxu0 %v4264_v39  ;;  %3497 = vmatpush1.bf16.msra.mxu1 %v4267_v40 }
  0xc5   : > { %1461 = vmatprep.mubr.f32.mxu0 %v4666_v3  ;;  %1532 = vmatprep.mubr.f32.mxu1 %v4666_v3  ;;  %v4279_v3 = vld [vmem:[%s5361_s4 + $0x148] ss:$16 sps:$4 sm:$0xff]  }
  0xc6   : > { %3467 = vmatprep.subr.bf16.mxu0 %v4268_v42  ;;  %3499 = vmatprep.subr.bf16.mxu1 %v4271_v43 }
  0xc8   : > { %3469 = vmatpush1.bf16.msra.mxu0 %v4270_v44  ;;  %3501 = vmatpush1.bf16.msra.mxu1 %v4273_v45  ;;  %v3118_v44 = vld [vmem:[%s5363_s6 + $0x4] sm:$0xf] }
  0xc9   : > { %3471 = vmatprep.subr.bf16.mxu0 %v4274_v46  ;;  %3503 = vmatprep.subr.bf16.mxu1 %v4277_v47  ;;  %v1545_v45 = vrot.slane %v3118_v44, %v1009_v8  ;;  %v1549_v46 = vrot.slane %v3118_v44, %v1013_v10 }
  0xcc   : > { %3473 = vmatpush1.bf16.msra.mxu0 %v4276_v48  ;;  %3505 = vmatpush1.bf16.msra.mxu1 %v4279_v3 }
  0xcd   : > { %3475 = vmatprep.subr.bf16.mxu0 %v4280_v49  ;;  %3507 = vmatprep.subr.bf16.mxu1 %v4283_v50 }
  0xd0   : > { %3477 = vmatpush1.bf16.msra.mxu0 %v4282_v51  ;;  %3509 = vmatpush1.bf16.msra.mxu1 %v4285_v52 }
  0xd1   : > { %3479 = vmatprep.subr.bf16.mxu0 %v4286_v53  ;;  %3511 = vmatprep.subr.bf16.mxu1 %v4289_v54  ;;  %v1557_v54 = vrot.slane %v3118_v44, %v1021_v15 }
  0xd4   : > { %3481 = vmatpush1.bf16.msra.mxu0 %v4288_v55  ;;  %3513 = vmatpush1.bf16.msra.mxu1 %v4291_v56  ;;  %v1553_v56 = vrot.slane %v3118_v44, %v1017_v23 }
  0xd5   : > { %3483 = vmatprep.subr.bf16.mxu0 %v4292_v57  ;;  %3515 = vmatprep.subr.bf16.mxu1 %v4295_v59 }
  0xd8   : > { %3485 = vmatpush1.bf16.msra.mxu0 %v4294_v58  ;;  %3517 = vmatpush1.bf16.msra.mxu1 %v4297_v60 }
  0xd9   : > { %3487 = vmatprep.subr.bf16.mxu0 %v4298_v61  ;;  %3519 = vmatprep.subr.bf16.mxu1 %v4301_v62 }
  0xdc   : > { %3489 = vmatpush1.bf16.msra.mxu0 %v4300_v63  ;;  %3521 = vmatpush1.bf16.msra.mxu1 %v4303_v0 }
  0xdd   : > { %3491 = vmatprep.subr.bf16.mxu0 %v4304_v1  ;;  %3523 = vmatprep.subr.bf16.mxu1 %v4307_v2  ;;  %v1060_v1 = vld [vmem:[#allocation3 + $0x8] sm:$0xff] }
  0xe0   : > { %3493 = vmatpush1.bf16.msra.mxu0 %v4306_v4  ;;  %3525 = vmatpush1.bf16.msra.mxu1 %v4309_v5 }
 0x176   : > { %v929_v13 = vpop.f32.mrb[0].mxu0  ;;  %v1000_v14 = vpop.f32.mrb[0].mxu1 }
 0x177   : > { %v1027_v16 = vadd.f32 %v1010_v11, %v929_v13  ;;  %v931_v17 = vpop.f32.mrb[1].mxu0  ;;  %v1002_v18 = vpop.f32.mrb[1].mxu1  ;;  %v1029_v27 = vadd.f32 %v1018_v25, %v1000_v14 }
 0x178   : > { %v1028_v19 = vadd.f32 %v1014_v12, %v931_v17  ;;  %v1030_v24 = vadd.f32 %v1022_v22, %v1002_v18 }
 0x179   : > { %v3051_v20 = vmul.f32 -1.442695, %v1027_v16 }
 0x17a   : > { %v3052_v21 = vmul.f32 -1.442695, %v1028_v19  ;;  %v3053_v26 = vmul.f32 -1.442695, %v1030_v24 }
 0x17b   : > { %4310 = vpow2.f32 %v3051_v20 }
 0x17c   : > { %4312 = vpow2.f32 %v3052_v21 }
 0x17d   : > { %4314 = vpow2.f32 %v3053_v26 }
 0x17e   : > { %4316 = vtanh.f32 %v1029_v27 }
 0x185   : > { %v4311_v28 = vpop.eup %4310 }
 0x186   : > { %v4313_v29 = vpop.eup %4312  ;;  %v1034_v30 = vadd.f32 1.0, %v4311_v28 }
 0x187   : > { %v1040_v31 = vadd.f32 1.0, %v4313_v29  ;;  %v4315_v32 = vpop.eup %4314 }
 0x188   : > { %4318 = vrcp.f32 %v1034_v30  ;;  %v4317_v33 = vpop.eup %4316  ;;  %v1047_v38 = vadd.f32 1.0, %v4315_v32 }
 0x189   : > { %4320 = vrcp.f32 %v1040_v31 }
 0x18a   : > { %4322 = vrcp.f32 %v1047_v38 }
 0x192   : > { %v4319_v35 = vpop.eup %4318 }
 0x193   : > { %v4321_v36 = vpop.eup %4320  ;;  %v1051_v37 = vmul.f32 %v4319_v35, %v4317_v33 }
 0x194   : > { %v1050_v39 = vmul.f32 %v4321_v36, %v528_v34  ;;  %v4323_v41 = vpop.eup %4322 }
 0x196   : > { %v1052_v40 = vadd.f32 %v1051_v37, %v1050_v39 }
 0x198   : > { %1056 = vst [vmem:[#allocation3] sm:$0xff] %v1052_v40  ;;  %4324 = vtanh.f32 %v1052_v40 }
 0x1a2   : > { %v4325_v42 = vpop.eup %4324 }
 0x1a3   : > { %v1054_v43 = vmul.f32 %v4325_v42, %v4323_v41 }
 0x1a5   : > { %1055 = vst [vmem:[#allocation2] sm:$0xff] %v1054_v43  ;;  %1462 = vmatmul.mubr.f32.vlgmr.msra.gmra.mrb[2].mxu0 %v1054_v43  ;;  %1533 = vmatmul.mubr.f32.vlgmr.msra.gmra.mrb[2].mxu1 %v1054_v43 }
 0x278   : > { %v1463_v47 = vpop.f32.mrb[2].mxu0  ;;  %v1534_v48 = vpop.f32.mrb[2].mxu1 }
 0x279   : > { %v1562_v3 = vadd.f32 %v1545_v45, %v1463_v47  ;;  %v1465_v49 = vpop.f32.mrb[3].mxu0  ;;  %v1536_v50 = vpop.f32.mrb[3].mxu1  ;;  %v1564_v58 = vadd.f32 %v1553_v56, %v1534_v48 }
 0x27a   : > { %v1563_v51 = vadd.f32 %v1549_v46, %v1465_v49  ;;  %v1565_v55 = vadd.f32 %v1557_v54, %v1536_v50 }
 0x27b   : > { %v3119_v52 = vmul.f32 -1.442695, %v1562_v3 }
 0x27c   : > { %v3120_v53 = vmul.f32 -1.442695, %v1563_v51  ;;  %v3121_v57 = vmul.f32 -1.442695, %v1565_v55 }
 0x27d   : > { %4326 = vpow2.f32 %v3119_v52 }
 0x27e   : > { %4328 = vpow2.f32 %v3120_v53 }
 0x27f   : > { %4330 = vpow2.f32 %v3121_v57 }
 0x280   : > { %4332 = vtanh.f32 %v1564_v58 }
 0x287   : > { %v4327_v59 = vpop.eup %4326 }
 0x288   : > { %v4329_v60 = vpop.eup %4328  ;;  %v1569_v61 = vadd.f32 1.0, %v4327_v59 }
 0x289   : > { %v1575_v62 = vadd.f32 1.0, %v4329_v60  ;;  %v4331_v63 = vpop.eup %4330 }
 0x28a   : > { %4334 = vrcp.f32 %v1569_v61  ;;  %v4333_v0 = vpop.eup %4332  ;;  %v1582_v6 = vadd.f32 1.0, %v4331_v63 }
 0x28b   : > { %4336 = vrcp.f32 %v1575_v62 }
 0x28c   : > { %4338 = vrcp.f32 %v1582_v6 }
 0x294   : > { %v4335_v2 = vpop.eup %4334 }
 0x295   : > { %v4337_v4 = vpop.eup %4336  ;;  %v1586_v5 = vmul.f32 %v4335_v2, %v4333_v0 }
 0x296   : > { %v1585_v7 = vmul.f32 %v4337_v4, %v1060_v1  ;;  %v4339_v9 = vpop.eup %4338 }
 0x298   : > { %v1587_v8 = vadd.f32 %v1586_v5, %v1585_v7 }
 0x29a   : > { %4340 = vtanh.f32 %v1587_v8  ;;  %1591 = vst [vmem:[#allocation3 + $0x8] sm:$0xff] %v1587_v8 }
 0x2a4   : > { %v4341_v10 = vpop.eup %4340 }
 0x2a5   : > { %v1589_v11 = vmul.f32 %v4341_v10, %v4339_v9 }
 0x2a7   : > { %1590 = vst [vmem:[#allocation2 + $0x8] sm:$0xff] %v1589_v11 }
 0x2a8 PF: > { %p3122_p4 = scmp.lt.s32.totalorder %s4752_s0, 8 }
 0x2a9   : > { %p3123_p5 = scmp.ne.s32.totalorder (!%p3122_p4), %s4752_s0, 8 }
 0x2aa   : > { %1595 = sbr.rel (%p3122_p4) target bundleno = 2148 (0x864), region = 88 }
 0x2b1   : > { %1599 = sbr.rel (%p3123_p5) target bundleno = 696 (0x2b8), region = 92  ;;  %v1600_v12 = vld [vmem:[%s5359_s2] sm:$0xff] (!%p3123_p5) }
 0x2b2   : > { %1601 = vst [vmem:[#allocation4] sm:$0xff] (!%p3123_p5), %v1600_v12 }
 0x2b8 PF: > { %v4342_v13 = vld [vmem:[#allocation9 + $0x4] ss:$16 sps:$4 sm:$0xff]   ;;  %v4344_v14 = vld [vmem:[#allocation9 + $0xc] ss:$16 sps:$4 sm:$0xff]   ;;  %v4667_v15 = vmov 0.0   ;;  %vm4669_vm0 = vmmov 0  }
 0x2b9   : > { %1861 = vmatprep.mubr.f32.mxu0 %v4667_v15  ;;  %1932 = vmatprep.mubr.f32.mxu1 %v4667_v15  ;;  %v4346_v16 = vld [vmem:[#allocation9] ss:$16 sps:$4 sm:$0xff]   ;;  %v4347_v17 = vld [vmem:[#allocation9 + $0x8] ss:$16 sps:$4 sm:$0xff]   ;;  %v4348_v18 = vld [vmem:[#allocation9 + $0x24] ss:$16 sps:$4 sm:$0xff]  }
 0x2ba   : > { %3527 = vmatprep.subr.bf16.mxu0 %v4342_v13  ;;  %3559 = vmatprep.subr.bf16.mxu1 %v4344_v14  ;;  %v4350_v19 = vld [vmem:[#allocation9 + $0x2c] ss:$16 sps:$4 sm:$0xff]   ;;  %v4352_v20 = vld [vmem:[#allocation9 + $0x20] ss:$16 sps:$4 sm:$0xff]   ;;  %v4353_v21 = vld [vmem:[#allocation9 + $0x28] ss:$16 sps:$4 sm:$0xff]  }
 0x2bb   : > { %3529 = vmatpush1.bf16.msra.mxu0 %v4346_v16  ;;  %3561 = vmatpush1.bf16.msra.mxu1 %v4347_v17  ;;  %v4354_v22 = vld [vmem:[#allocation9 + $0x44] ss:$16 sps:$4 sm:$0xff]   ;;  %v4356_v23 = vld [vmem:[#allocation9 + $0x4c] ss:$16 sps:$4 sm:$0xff]   ;;  %v4358_v24 = vld [vmem:[#allocation9 + $0x40] ss:$16 sps:$4 sm:$0xff]  }
 0x2bc   : > { %3531 = vmatprep.subr.bf16.mxu0 %v4348_v18  ;;  %3563 = vmatprep.subr.bf16.mxu1 %v4350_v19  ;;  %v4359_v25 = vld [vmem:[#allocation9 + $0x48] ss:$16 sps:$4 sm:$0xff]   ;;  %v4360_v26 = vld [vmem:[#allocation9 + $0x64] ss:$16 sps:$4 sm:$0xff]   ;;  %v4362_v27 = vld [vmem:[#allocation9 + $0x6c] ss:$16 sps:$4 sm:$0xff]  }
 0x2bd   : > { %v4364_v28 = vld [vmem:[#allocation9 + $0x60] ss:$16 sps:$4 sm:$0xff]   ;;  %v4365_v29 = vld [vmem:[#allocation9 + $0x68] ss:$16 sps:$4 sm:$0xff]   ;;  %v4366_v30 = vld [vmem:[#allocation9 + $0x84] ss:$16 sps:$4 sm:$0xff]  }
 0x2be   : > { %v4368_v31 = vld [vmem:[#allocation9 + $0x8c] ss:$16 sps:$4 sm:$0xff]   ;;  %v4370_v32 = vld [vmem:[#allocation9 + $0x80] ss:$16 sps:$4 sm:$0xff]   ;;  %v4371_v33 = vld [vmem:[#allocation9 + $0x88] ss:$16 sps:$4 sm:$0xff]  }
 0x2bf   : > { %3533 = vmatpush1.bf16.msra.mxu0 %v4352_v20  ;;  %3565 = vmatpush1.bf16.msra.mxu1 %v4353_v21  ;;  %v4372_v34 = vld [vmem:[#allocation9 + $0xa4] ss:$16 sps:$4 sm:$0xff]   ;;  %v4374_v35 = vld [vmem:[#allocation9 + $0xac] ss:$16 sps:$4 sm:$0xff]   ;;  %v4376_v36 = vld [vmem:[#allocation9 + $0xa0] ss:$16 sps:$4 sm:$0xff]  }
 0x2c0   : > { %3535 = vmatprep.subr.bf16.mxu0 %v4354_v22  ;;  %3567 = vmatprep.subr.bf16.mxu1 %v4356_v23  ;;  %v4377_v37 = vld [vmem:[#allocation9 + $0xa8] ss:$16 sps:$4 sm:$0xff]   ;;  %v4378_v38 = vld [vmem:[#allocation9 + $0xc4] ss:$16 sps:$4 sm:$0xff]   ;;  %v4380_v39 = vld [vmem:[#allocation9 + $0xcc] ss:$16 sps:$4 sm:$0xff]  }
 0x2c1   : > { %v4382_v40 = vld [vmem:[#allocation9 + $0xc0] ss:$16 sps:$4 sm:$0xff]   ;;  %v4383_v41 = vld [vmem:[#allocation9 + $0xc8] ss:$16 sps:$4 sm:$0xff]   ;;  %v4384_v42 = vld [vmem:[#allocation9 + $0xe4] ss:$16 sps:$4 sm:$0xff]  }
 0x2c2   : > { %v4386_v43 = vld [vmem:[#allocation9 + $0xec] ss:$16 sps:$4 sm:$0xff]   ;;  %v4388_v44 = vld [vmem:[#allocation9 + $0xe0] ss:$16 sps:$4 sm:$0xff]   ;;  %v4389_v45 = vld [vmem:[#allocation9 + $0xe8] ss:$16 sps:$4 sm:$0xff]  }
 0x2c3   : > { %3537 = vmatpush1.bf16.msra.mxu0 %v4358_v24  ;;  %3569 = vmatpush1.bf16.msra.mxu1 %v4359_v25  ;;  %v4390_v46 = vld [vmem:[#allocation7 + $0x4] ss:$16 sps:$4 sm:$0xff]   ;;  %v4393_v47 = vld [vmem:[#allocation7 + $0xc] ss:$16 sps:$4 sm:$0xff]   ;;  %v4392_v48 = vld [vmem:[#allocation7] ss:$16 sps:$4 sm:$0xff]  }
 0x2c4   : > { %3539 = vmatprep.subr.bf16.mxu0 %v4360_v26  ;;  %3571 = vmatprep.subr.bf16.mxu1 %v4362_v27  ;;  %v4395_v3 = vld [vmem:[#allocation7 + $0x8] ss:$16 sps:$4 sm:$0xff]   ;;  %v4396_v50 = vld [vmem:[#allocation7 + $0x24] ss:$16 sps:$4 sm:$0xff]   ;;  %v4399_v51 = vld [vmem:[#allocation7 + $0x2c] ss:$16 sps:$4 sm:$0xff]  }
 0x2c5   : > { %v1603_v49 = vld [vmem:[#allocation2] sm:$0xff]  ;;  %v4398_v52 = vld [vmem:[#allocation7 + $0x20] ss:$16 sps:$4 sm:$0xff]   ;;  %v4402_v54 = vld [vmem:[#allocation7 + $0x44] ss:$16 sps:$4 sm:$0xff]   ;;  %s2778_s24 = sadd.s32 1, %s4752_s0 }
 0x2c6   : > { %v4401_v53 = vld [vmem:[#allocation7 + $0x28] ss:$16 sps:$4 sm:$0xff]   ;;  %v4405_v55 = vld [vmem:[#allocation7 + $0x4c] ss:$16 sps:$4 sm:$0xff]   ;;  %v4404_v56 = vld [vmem:[#allocation7 + $0x40] ss:$16 sps:$4 sm:$0xff]  }
 0x2c7   : > { %3541 = vmatpush1.bf16.msra.mxu0 %v4364_v28  ;;  %3573 = vmatpush1.bf16.msra.mxu1 %v4365_v29  ;;  %v4407_v57 = vld [vmem:[#allocation7 + $0x48] ss:$16 sps:$4 sm:$0xff]   ;;  %v4408_v58 = vld [vmem:[#allocation7 + $0x64] ss:$16 sps:$4 sm:$0xff]   ;;  %v4411_v59 = vld [vmem:[#allocation7 + $0x6c] ss:$16 sps:$4 sm:$0xff]  }
 0x2c8   : > { %3543 = vmatprep.subr.bf16.mxu0 %v4366_v30  ;;  %3575 = vmatprep.subr.bf16.mxu1 %v4368_v31  ;;  %v4410_v60 = vld [vmem:[#allocation7 + $0x60] ss:$16 sps:$4 sm:$0xff]   ;;  %v4413_v61 = vld [vmem:[#allocation7 + $0x68] ss:$16 sps:$4 sm:$0xff]   ;;  %v4414_v62 = vld [vmem:[#allocation7 + $0x84] ss:$16 sps:$4 sm:$0xff]  }
 0x2c9   : > { %v4417_v63 = vld [vmem:[#allocation7 + $0x8c] ss:$16 sps:$4 sm:$0xff]   ;;  %v4416_v0 = vld [vmem:[#allocation7 + $0x80] ss:$16 sps:$4 sm:$0xff]   ;;  %v4419_v1 = vld [vmem:[#allocation7 + $0x88] ss:$16 sps:$4 sm:$0xff]  }
 0x2ca   : > { %v4420_v2 = vld [vmem:[#allocation7 + $0xa4] ss:$16 sps:$4 sm:$0xff]   ;;  %v4423_v4 = vld [vmem:[#allocation7 + $0xac] ss:$16 sps:$4 sm:$0xff]   ;;  %v4422_v5 = vld [vmem:[#allocation7 + $0xa0] ss:$16 sps:$4 sm:$0xff]  }
 0x2cb   : > { %3545 = vmatpush1.bf16.msra.mxu0 %v4370_v32  ;;  %3577 = vmatpush1.bf16.msra.mxu1 %v4371_v33  ;;  %v4425_v6 = vld [vmem:[#allocation7 + $0xa8] ss:$16 sps:$4 sm:$0xff]   ;;  %v4426_v7 = vld [vmem:[#allocation7 + $0xc4] ss:$16 sps:$4 sm:$0xff]   ;;  %v4429_v8 = vld [vmem:[#allocation7 + $0xcc] ss:$16 sps:$4 sm:$0xff]  }
 0x2cc   : > { %3547 = vmatprep.subr.bf16.mxu0 %v4372_v34  ;;  %3579 = vmatprep.subr.bf16.mxu1 %v4374_v35  ;;  %v4428_v9 = vld [vmem:[#allocation7 + $0xc0] ss:$16 sps:$4 sm:$0xff]   ;;  %v4431_v10 = vld [vmem:[#allocation7 + $0xc8] ss:$16 sps:$4 sm:$0xff]   ;;  %v4432_v11 = vld [vmem:[#allocation7 + $0xe4] ss:$16 sps:$4 sm:$0xff]  }
 0x2cd   : > { %v4435_v12 = vld [vmem:[#allocation7 + $0xec] ss:$16 sps:$4 sm:$0xff]   ;;  %v4434_v13 = vld [vmem:[#allocation7 + $0xe0] ss:$16 sps:$4 sm:$0xff]   ;;  %v4437_v14 = vld [vmem:[#allocation7 + $0xe8] ss:$16 sps:$4 sm:$0xff]  }
 0x2ce   : > { %v4438_v16 = vld [vmem:[#allocation9 + $0x104] ss:$16 sps:$4 sm:$0xff]   ;;  %v4441_v17 = vld [vmem:[#allocation9 + $0x10c] ss:$16 sps:$4 sm:$0xff]   ;;  %v4440_v19 = vld [vmem:[#allocation9 + $0x100] ss:$16 sps:$4 sm:$0xff]  }
 0x2cf   : > { %3549 = vmatpush1.bf16.msra.mxu0 %v4376_v36  ;;  %3581 = vmatpush1.bf16.msra.mxu1 %v4377_v37  ;;  %v1602_v18 = vld [vmem:[#allocation4] sm:$0xff]  ;;  %v4444_v21 = vld [vmem:[#allocation9 + $0x124] ss:$16 sps:$4 sm:$0xff]   ;;  %v4446_v23 = vld [vmem:[#allocation9 + $0x120] ss:$16 sps:$4 sm:$0xff]   ;;  %p3132_p6 = scmp.ge.s32.totalorder %s2778_s24, 15 }
 0x2d0   : > { %3551 = vmatprep.subr.bf16.mxu0 %v4378_v38  ;;  %3583 = vmatprep.subr.bf16.mxu1 %v4380_v39  ;;  %v4443_v20 = vld [vmem:[#allocation9 + $0x108] ss:$16 sps:$4 sm:$0xff]   ;;  %v4447_v22 = vld [vmem:[#allocation9 + $0x12c] ss:$16 sps:$4 sm:$0xff]   ;;  %v4450_v25 = vld [vmem:[#allocation9 + $0x144] ss:$16 sps:$4 sm:$0xff]  }
 0x2d1   : > { %v4449_v24 = vld [vmem:[#allocation9 + $0x128] ss:$16 sps:$4 sm:$0xff]   ;;  %v4453_v26 = vld [vmem:[#allocation9 + $0x14c] ss:$16 sps:$4 sm:$0xff]   ;;  %v4452_v27 = vld [vmem:[#allocation9 + $0x140] ss:$16 sps:$4 sm:$0xff]  }
 0x2d2   : > { %v4455_v28 = vld [vmem:[#allocation9 + $0x148] ss:$16 sps:$4 sm:$0xff]   ;;  %v4456_v29 = vld [vmem:[#allocation9 + $0x164] ss:$16 sps:$4 sm:$0xff]   ;;  %v4459_v30 = vld [vmem:[#allocation9 + $0x16c] ss:$16 sps:$4 sm:$0xff]  }
 0x2d3   : > { %3553 = vmatpush1.bf16.msra.mxu0 %v4382_v40  ;;  %3585 = vmatpush1.bf16.msra.mxu1 %v4383_v41  ;;  %v4458_v31 = vld [vmem:[#allocation9 + $0x160] ss:$16 sps:$4 sm:$0xff]   ;;  %v4461_v32 = vld [vmem:[#allocation9 + $0x168] ss:$16 sps:$4 sm:$0xff]   ;;  %v4462_v33 = vld [vmem:[#allocation9 + $0x184] ss:$16 sps:$4 sm:$0xff]  }
 0x2d4   : > { %3555 = vmatprep.subr.bf16.mxu0 %v4384_v42  ;;  %3587 = vmatprep.subr.bf16.mxu1 %v4386_v43  ;;  %v4465_v34 = vld [vmem:[#allocation9 + $0x18c] ss:$16 sps:$4 sm:$0xff]   ;;  %v4464_v35 = vld [vmem:[#allocation9 + $0x180] ss:$16 sps:$4 sm:$0xff]   ;;  %v4467_v36 = vld [vmem:[#allocation9 + $0x188] ss:$16 sps:$4 sm:$0xff]  }
 0x2d5   : > { %v4468_v37 = vld [vmem:[#allocation9 + $0x1a4] ss:$16 sps:$4 sm:$0xff]   ;;  %v4471_v38 = vld [vmem:[#allocation9 + $0x1ac] ss:$16 sps:$4 sm:$0xff]   ;;  %v4470_v39 = vld [vmem:[#allocation9 + $0x1a0] ss:$16 sps:$4 sm:$0xff]  }
 0x2d6   : > { %v4473_v40 = vld [vmem:[#allocation9 + $0x1a8] ss:$16 sps:$4 sm:$0xff]   ;;  %v4474_v41 = vld [vmem:[#allocation9 + $0x1c4] ss:$16 sps:$4 sm:$0xff]   ;;  %v4477_v42 = vld [vmem:[#allocation9 + $0x1cc] ss:$16 sps:$4 sm:$0xff]  }
 0x2d7   : > { %3557 = vmatpush1.bf16.msra.mxu0 %v4388_v44  ;;  %3589 = vmatpush1.bf16.msra.mxu1 %v4389_v45  ;;  %v4476_v43 = vld [vmem:[#allocation9 + $0x1c0] ss:$16 sps:$4 sm:$0xff]   ;;  %v4479_v44 = vld [vmem:[#allocation9 + $0x1c8] ss:$16 sps:$4 sm:$0xff]   ;;  %v4480_v45 = vld [vmem:[#allocation9 + $0x1e4] ss:$16 sps:$4 sm:$0xff]  }
 0x2d8   : > { %3591 = vmatprep.subr.bf16.mxu0 %v4390_v46  ;;  %3623 = vmatprep.subr.bf16.mxu1 %v4393_v47  ;;  %v4483_v46 = vld [vmem:[#allocation9 + $0x1ec] ss:$16 sps:$4 sm:$0xff]   ;;  %v4482_v47 = vld [vmem:[#allocation9 + $0x1e0] ss:$16 sps:$4 sm:$0xff]   ;;  %vm4671_vm4 = vmmov (!%p3132_p6), 0   ;;  %s2913_s14 = sadd.s32 (!%p3132_p6), 4294967289, %s4752_s0 }
 0x2da   : > { %1862 = vmatmul.mubr.f32.vlgmr.msra.gmra.mrb[0].mxu0 %v1603_v49  ;;  %1933 = vmatmul.mubr.f32.vlgmr.msra.gmra.mrb[0].mxu1 %v1603_v49  ;;  %v4489_v49 = vld [vmem:[#allocation7 + $0x10c] ss:$16 sps:$4 sm:$0xff]  }
 0x2db   : > { %3593 = vmatpush1.bf16.msra.mxu0 %v4392_v48  ;;  %3625 = vmatpush1.bf16.msra.mxu1 %v4395_v3  ;;  %v4485_v48 = vld [vmem:[#allocation9 + $0x1e8] ss:$16 sps:$4 sm:$0xff]   ;;  %v4486_v3 = vld [vmem:[#allocation7 + $0x104] ss:$16 sps:$4 sm:$0xff]  }
 0x2dc   : > { %3595 = vmatprep.subr.bf16.mxu0 %v4396_v50  ;;  %3627 = vmatprep.subr.bf16.mxu1 %v4399_v51  ;;  %v4488_v50 = vld [vmem:[#allocation7 + $0x100] ss:$16 sps:$4 sm:$0xff]   ;;  %v4491_v51 = vld [vmem:[#allocation7 + $0x108] ss:$16 sps:$4 sm:$0xff]  }
 0x2dd   : > { %2003 = vmatprep.mubr.f32.mxu0 %v4667_v15  ;;  %2074 = vmatprep.mubr.f32.mxu1 %v4667_v15 }
 0x2df   : > { %3597 = vmatpush1.bf16.msra.mxu0 %v4398_v52  ;;  %3629 = vmatpush1.bf16.msra.mxu1 %v4401_v53  ;;  %v2134_v52 = vld [vmem:[#allocation2 + $0x8] sm:$0xff] }
 0x2e0   : > { %3599 = vmatprep.subr.bf16.mxu0 %v4402_v54  ;;  %3631 = vmatprep.subr.bf16.mxu1 %v4405_v55  ;;  %v4492_v53 = vld [vmem:[#allocation7 + $0x124] ss:$16 sps:$4 sm:$0xff]   ;;  %v4495_v54 = vld [vmem:[#allocation7 + $0x12c] ss:$16 sps:$4 sm:$0xff]   ;;  %v4494_v55 = vld [vmem:[#allocation7 + $0x120] ss:$16 sps:$4 sm:$0xff]  }
 0x2e3   : > { %3601 = vmatpush1.bf16.msra.mxu0 %v4404_v56  ;;  %3633 = vmatpush1.bf16.msra.mxu1 %v4407_v57  ;;  %v4497_v56 = vld [vmem:[#allocation7 + $0x128] ss:$16 sps:$4 sm:$0xff]   ;;  %v4498_v57 = vld [vmem:[#allocation7 + $0x144] ss:$16 sps:$4 sm:$0xff]  }
 0x2e4   : > { %3603 = vmatprep.subr.bf16.mxu0 %v4408_v58  ;;  %3635 = vmatprep.subr.bf16.mxu1 %v4411_v59  ;;  %v4501_v58 = vld [vmem:[#allocation7 + $0x14c] ss:$16 sps:$4 sm:$0xff]   ;;  %v4500_v59 = vld [vmem:[#allocation7 + $0x140] ss:$16 sps:$4 sm:$0xff]  }
 0x2e7   : > { %3605 = vmatpush1.bf16.msra.mxu0 %v4410_v60  ;;  %3637 = vmatpush1.bf16.msra.mxu1 %v4413_v61  ;;  %v4503_v60 = vld [vmem:[#allocation7 + $0x148] ss:$16 sps:$4 sm:$0xff]   ;;  %v4504_v61 = vld [vmem:[#allocation7 + $0x164] ss:$16 sps:$4 sm:$0xff]  }
 0x2e8   : > { %3607 = vmatprep.subr.bf16.mxu0 %v4414_v62  ;;  %3639 = vmatprep.subr.bf16.mxu1 %v4417_v63  ;;  %v4507_v62 = vld [vmem:[#allocation7 + $0x16c] ss:$16 sps:$4 sm:$0xff]   ;;  %v4506_v63 = vld [vmem:[#allocation7 + $0x160] ss:$16 sps:$4 sm:$0xff]  }
 0x2eb   : > { %3609 = vmatpush1.bf16.msra.mxu0 %v4416_v0  ;;  %3641 = vmatpush1.bf16.msra.mxu1 %v4419_v1  ;;  %v4509_v0 = vld [vmem:[#allocation7 + $0x168] ss:$16 sps:$4 sm:$0xff]   ;;  %v4510_v1 = vld [vmem:[#allocation7 + $0x184] ss:$16 sps:$4 sm:$0xff]  }
 0x2ec   : > { %3611 = vmatprep.subr.bf16.mxu0 %v4420_v2  ;;  %3643 = vmatprep.subr.bf16.mxu1 %v4423_v4  ;;  %v4513_v2 = vld [vmem:[#allocation7 + $0x18c] ss:$16 sps:$4 sm:$0xff]   ;;  %v4512_v4 = vld [vmem:[#allocation7 + $0x180] ss:$16 sps:$4 sm:$0xff]  }
 0x2ef   : > { %3613 = vmatpush1.bf16.msra.mxu0 %v4422_v5  ;;  %3645 = vmatpush1.bf16.msra.mxu1 %v4425_v6  ;;  %v4515_v5 = vld [vmem:[#allocation7 + $0x188] ss:$16 sps:$4 sm:$0xff]   ;;  %v4516_v6 = vld [vmem:[#allocation7 + $0x1a4] ss:$16 sps:$4 sm:$0xff]  }
 0x2f0   : > { %3615 = vmatprep.subr.bf16.mxu0 %v4426_v7  ;;  %3647 = vmatprep.subr.bf16.mxu1 %v4429_v8  ;;  %v4518_v7 = vld [vmem:[#allocation7 + $0x1a0] ss:$16 sps:$4 sm:$0xff]   ;;  %v4519_v8 = vld [vmem:[#allocation7 + $0x1ac] ss:$16 sps:$4 sm:$0xff]  }
 0x2f3   : > { %3617 = vmatpush1.bf16.msra.mxu0 %v4428_v9  ;;  %3649 = vmatpush1.bf16.msra.mxu1 %v4431_v10  ;;  %v4521_v9 = vld [vmem:[#allocation7 + $0x1a8] ss:$16 sps:$4 sm:$0xff]   ;;  %v4522_v10 = vld [vmem:[#allocation7 + $0x1c4] ss:$16 sps:$4 sm:$0xff]  }
 0x2f4   : > { %3619 = vmatprep.subr.bf16.mxu0 %v4432_v11  ;;  %3651 = vmatprep.subr.bf16.mxu1 %v4435_v12  ;;  %v4525_v11 = vld [vmem:[#allocation7 + $0x1cc] ss:$16 sps:$4 sm:$0xff]   ;;  %v4524_v12 = vld [vmem:[#allocation7 + $0x1c0] ss:$16 sps:$4 sm:$0xff]  }
 0x2f7   : > { %3621 = vmatpush1.bf16.msra.mxu0 %v4434_v13  ;;  %3653 = vmatpush1.bf16.msra.mxu1 %v4437_v14  ;;  %v4527_v13 = vld [vmem:[#allocation7 + $0x1c8] ss:$16 sps:$4 sm:$0xff]   ;;  %v4528_v14 = vld [vmem:[#allocation7 + $0x1e4] ss:$16 sps:$4 sm:$0xff]  }
 0x2f8   : > { %3655 = vmatprep.subr.bf16.mxu0 %v4438_v16  ;;  %3687 = vmatprep.subr.bf16.mxu1 %v4441_v17  ;;  %v4531_v16 = vld [vmem:[#allocation7 + $0x1ec] ss:$16 sps:$4 sm:$0xff]   ;;  %v4530_v17 = vld [vmem:[#allocation7 + $0x1e0] ss:$16 sps:$4 sm:$0xff]  }
 0x2fa   : > { %2004 = vmatmul.mubr.f32.vlgmr.msra.gmra.mrb[0].mxu0 %v1602_v18  ;;  %2075 = vmatmul.mubr.f32.vlgmr.msra.gmra.mrb[0].mxu1 %v1602_v18  ;;  %v4533_v18 = vld [vmem:[#allocation7 + $0x1e8] ss:$16 sps:$4 sm:$0xff]  }
 0x2fb   : > { %3657 = vmatpush1.bf16.msra.mxu0 %v4440_v19  ;;  %3689 = vmatpush1.bf16.msra.mxu1 %v4443_v20  ;;  %v2083_v19 = vlaneseq }
 0x2fc   : > { %3659 = vmatprep.subr.bf16.mxu0 %v4444_v21  ;;  %3691 = vmatprep.subr.bf16.mxu1 %v4447_v22  ;;  %v2081_v22 = vld [vmem:[%s5366_s9] sm:$0xf] }
 0x2fd   : > { %2395 = vmatprep.mubr.f32.mxu0 %v4667_v15  ;;  %2466 = vmatprep.mubr.f32.mxu1 %v4667_v15  ;;  %v5269_v20 = vshrl.u32 %v2083_v19, 7 }
 0x2ff   : > { %3661 = vmatpush1.bf16.msra.mxu0 %v4446_v23  ;;  %3693 = vmatpush1.bf16.msra.mxu1 %v4449_v24  ;;  %v2085_v21 = vsub.s32 0, %v5269_v20  ;;  %v2089_v23 = vsub.s32 1, %v5269_v20 }
 0x300   : > { %3663 = vmatprep.subr.bf16.mxu0 %v4450_v25  ;;  %3695 = vmatprep.subr.bf16.mxu1 %v4453_v26 }
 0x301   : > { %v2086_v24 = vrot.slane %v2081_v22, %v2085_v21  ;;  %v2090_v25 = vrot.slane %v2081_v22, %v2089_v23 }
 0x303   : > { %3665 = vmatpush1.bf16.msra.mxu0 %v4452_v27  ;;  %3697 = vmatpush1.bf16.msra.mxu1 %v4455_v28  ;;  %v2097_v28 = vsub.s32 3, %v5269_v20 }
 0x304   : > { %3667 = vmatprep.subr.bf16.mxu0 %v4456_v29  ;;  %3699 = vmatprep.subr.bf16.mxu1 %v4459_v30 }
 0x307   : > { %3669 = vmatpush1.bf16.msra.mxu0 %v4458_v31  ;;  %3701 = vmatpush1.bf16.msra.mxu1 %v4461_v32 }
 0x308   : > { %3671 = vmatprep.subr.bf16.mxu0 %v4462_v33  ;;  %3703 = vmatprep.subr.bf16.mxu1 %v4465_v34 }
 0x30b   : > { %3673 = vmatpush1.bf16.msra.mxu0 %v4464_v35  ;;  %3705 = vmatpush1.bf16.msra.mxu1 %v4467_v36  ;;  %v2098_v35 = vrot.slane %v2081_v22, %v2097_v28  ;;  %v2093_v36 = vsub.s32 2, %v5269_v20 }
 0x30c   : > { %3675 = vmatprep.subr.bf16.mxu0 %v4468_v37  ;;  %3707 = vmatprep.subr.bf16.mxu1 %v4471_v38 }
 0x30d   : > { %v2094_v38 = vrot.slane %v2081_v22, %v2093_v36 }
 0x30f   : > { %3677 = vmatpush1.bf16.msra.mxu0 %v4470_v39  ;;  %3709 = vmatpush1.bf16.msra.mxu1 %v4473_v40 }
 0x310   : > { %3679 = vmatprep.subr.bf16.mxu0 %v4474_v41  ;;  %3711 = vmatprep.subr.bf16.mxu1 %v4477_v42 }
 0x313   : > { %3681 = vmatpush1.bf16.msra.mxu0 %v4476_v43  ;;  %3713 = vmatpush1.bf16.msra.mxu1 %v4479_v44 }
 0x314   : > { %3683 = vmatprep.subr.bf16.mxu0 %v4480_v45  ;;  %3715 = vmatprep.subr.bf16.mxu1 %v4483_v46 }
 0x317   : > { %3685 = vmatpush1.bf16.msra.mxu0 %v4482_v47  ;;  %3717 = vmatpush1.bf16.msra.mxu1 %v4485_v48  ;;  %v1604_v47 = vld [vmem:[#allocation3] sm:$0xff] }
 0x318   : > { %3719 = vmatprep.subr.bf16.mxu0 %v4486_v3  ;;  %3751 = vmatprep.subr.bf16.mxu1 %v4489_v49 }
 0x31a   : > { %2396 = vmatmul.mubr.f32.vlgmr.msra.gmra.mrb[2].mxu0 %v2134_v52  ;;  %2467 = vmatmul.mubr.f32.vlgmr.msra.gmra.mrb[2].mxu1 %v2134_v52 }
 0x31b   : > { %3721 = vmatpush1.bf16.msra.mxu0 %v4488_v50  ;;  %3753 = vmatpush1.bf16.msra.mxu1 %v4491_v51 }
 0x31c   : > { %2537 = vmatprep.mubr.f32.mxu0 %v4667_v15  ;;  %2608 = vmatprep.mubr.f32.mxu1 %v4667_v15 }
 0x31d   : > { %3723 = vmatprep.subr.bf16.mxu0 %v4492_v53  ;;  %3755 = vmatprep.subr.bf16.mxu1 %v4495_v54 }
 0x31f   : > { %3725 = vmatpush1.bf16.msra.mxu0 %v4494_v55  ;;  %3757 = vmatpush1.bf16.msra.mxu1 %v4497_v56  ;;  %v4668_v56 = vmov 0.0|0.0  }
 0x320   : > { %3727 = vmatprep.subr.bf16.mxu0 %v4498_v57  ;;  %3759 = vmatprep.subr.bf16.mxu1 %v4501_v58  ;;  %v3151_v57 = vld [vmem:[%s5367_s10] sm:$0xff]   ;;  %v3182_v58 = vld [vmem:[%s5367_s10 + $0x8] sm:$0xff]  }
 0x323   : > { %3729 = vmatpush1.bf16.msra.mxu0 %v4500_v59  ;;  %3761 = vmatpush1.bf16.msra.mxu1 %v4503_v60  ;;  %v3183_v59 = vld [vmem:[%s5367_s10 + $0x10] sm:$0xff]   ;;  %v3184_v60 = vld [vmem:[%s5367_s10 + $0x18] sm:$0xff]  }
 0x324   : > { %3731 = vmatprep.subr.bf16.mxu0 %v4504_v61  ;;  %3763 = vmatprep.subr.bf16.mxu1 %v4507_v62  ;;  %v3185_v61 = vld [vmem:[%s5367_s10 + $0x20] sm:$0xff]   ;;  %v3186_v62 = vld [vmem:[%s5367_s10 + $0x28] sm:$0xff]  }
 0x327   : > { %3733 = vmatpush1.bf16.msra.mxu0 %v4506_v63  ;;  %3765 = vmatpush1.bf16.msra.mxu1 %v4509_v0  ;;  %v3187_v63 = vld [vmem:[%s5367_s10 + $0x30] sm:$0xff]   ;;  %v3188_v0 = vld [vmem:[%s5367_s10 + $0x38] sm:$0xff]  }
 0x328   : > { %3735 = vmatprep.subr.bf16.mxu0 %v4510_v1  ;;  %3767 = vmatprep.subr.bf16.mxu1 %v4513_v2  ;;  %v3127_v1 = vld [vmem:[%s5366_s9 + $0x4] sm:$0xf] }
 0x329   : > { %v2625_v2 = vrot.slane %v3127_v1, %v2089_v23 }
 0x32b   : > { %3737 = vmatpush1.bf16.msra.mxu0 %v4512_v4  ;;  %3769 = vmatpush1.bf16.msra.mxu1 %v4515_v5 }
 0x32c   : > { %3739 = vmatprep.subr.bf16.mxu0 %v4516_v6  ;;  %3771 = vmatprep.subr.bf16.mxu1 %v4519_v8 }
 0x32f   : > { %3741 = vmatpush1.bf16.msra.mxu0 %v4518_v7  ;;  %3773 = vmatpush1.bf16.msra.mxu1 %v4521_v9 }
 0x330   : > { %3743 = vmatprep.subr.bf16.mxu0 %v4522_v10  ;;  %3775 = vmatprep.subr.bf16.mxu1 %v4525_v11 }
 0x333   : > { %3745 = vmatpush1.bf16.msra.mxu0 %v4524_v12  ;;  %3777 = vmatpush1.bf16.msra.mxu1 %v4527_v13  ;;  %v2633_v12 = vrot.slane %v3127_v1, %v2097_v28 }
 0x334   : > { %3747 = vmatprep.subr.bf16.mxu0 %v4528_v14  ;;  %3779 = vmatprep.subr.bf16.mxu1 %v4531_v16  ;;  %v2629_v14 = vrot.slane %v3127_v1, %v2093_v36 }
 0x337   : > { %3749 = vmatpush1.bf16.msra.mxu0 %v4530_v17  ;;  %3781 = vmatpush1.bf16.msra.mxu1 %v4533_v18 }
 0x338   : > { %3782 = vmatprep.subr.bf16.mxu0 %v4668_v56 }
 0x3cd   : > { %v2005_v26 = vpop.f32.mrb[0].mxu0  ;;  %v2076_v27 = vpop.f32.mrb[0].mxu1 }
 0x3ce   : > { %v2103_v29 = vadd.f32 %v2086_v24, %v2005_v26  ;;  %v2007_v30 = vpop.f32.mrb[1].mxu0  ;;  %v2078_v31 = vpop.f32.mrb[1].mxu1  ;;  %v2105_v40 = vadd.f32 %v2094_v38, %v2076_v27  ;;  %v2136_v26 = vld [vmem:[#allocation3 + $0x8] sm:$0xff] }
 0x3cf   : > { %v2104_v32 = vadd.f32 %v2090_v25, %v2007_v30  ;;  %v2106_v37 = vadd.f32 %v2098_v35, %v2078_v31  ;;  %v3131_v35 = vld [vmem:[%s5368_s11] ss:$0 sm:$0xff] }
 0x3d0   : > { %v3124_v33 = vmul.f32 -1.442695, %v2103_v29 }
 0x3d1   : > { %v3125_v34 = vmul.f32 -1.442695, %v2104_v32  ;;  %v3126_v39 = vmul.f32 -1.442695, %v2106_v37 }
 0x3d2   : > { %4534 = vpow2.f32 %v3124_v33 }
 0x3d3   : > { %4536 = vpow2.f32 %v3125_v34 }
 0x3d4   : > { %4538 = vpow2.f32 %v3126_v39  ;;  %v2784_v39 = vand.u32 (!%p3132_p6), 127, %v2083_v19  ;;  %v4567_v19 = vld [vmem:[%s5369_s12 + $0x8] sm:$0xff] (!%p3132_p6)  }
 0x3d5   : > { %4540 = vtanh.f32 %v2105_v40 }
 0x3d6   : > { %vm2785_vm1 = vcmp.lt.s32.totalorder (!%p3132_p6), %v2784_v39, 24 }
 0x3dc   : > { %v4535_v41 = vpop.eup %4534 }
 0x3dd   : > { %v4537_v42 = vpop.eup %4536  ;;  %v2110_v43 = vadd.f32 1.0, %v4535_v41 }
 0x3de   : > { %v2116_v44 = vadd.f32 1.0, %v4537_v42  ;;  %v4539_v45 = vpop.eup %4538 }
 0x3df   : > { %4542 = vrcp.f32 %v2110_v43  ;;  %v4541_v46 = vpop.eup %4540  ;;  %v2123_v50 = vadd.f32 1.0, %v4539_v45  ;;  %v4566_v45 = vld [vmem:[%s5369_s12] sm:$0xff] (!%p3132_p6)  }
 0x3e0   : > { %4544 = vrcp.f32 %v2116_v44 }
 0x3e1   : > { %4546 = vrcp.f32 %v2123_v50  ;;  %v4572_v50 = vld [vmem:[%s5369_s12 + $0x30] sm:$0xff] (!%p3132_p6)  }
 0x3e9   : > { %v4543_v48 = vpop.eup %4542 }
 0x3ea   : > { %v4545_v3 = vpop.eup %4544  ;;  %v2127_v49 = vmul.f32 %v4543_v48, %v4541_v46  ;;  %v4670_v46 = vmov (!%p3132_p6), 0.0   ;;  %v4569_v48 = vld [vmem:[%s5369_s12 + $0x18] sm:$0xff] (!%p3132_p6)  }
 0x3eb   : > { %v2126_v51 = vmul.f32 %v4545_v3, %v1604_v47  ;;  %v4547_v53 = vpop.eup %4546  ;;  %v4568_v47 = vld [vmem:[%s5369_s12 + $0x10] sm:$0xff] (!%p3132_p6)   ;;  %v4570_v3 = vld [vmem:[%s5369_s12 + $0x20] sm:$0xff] (!%p3132_p6)  }
 0x3ed   : > { %v2128_v52 = vadd.f32 %v2127_v49, %v2126_v51  ;;  %v4571_v49 = vld [vmem:[%s5369_s12 + $0x28] sm:$0xff] (!%p3132_p6)  }
 0x3ef   : > { %2132 = vst [vmem:[#allocation3] sm:$0xff] %v2128_v52  ;;  %4548 = vtanh.f32 %v2128_v52 }
 0x3f9   : > { %v4549_v54 = vpop.eup %4548 }
 0x3fa   : > { %v2130_v55 = vmul.f32 %v4549_v54, %v4547_v53 }
 0x3fc   : > { %2131 = vst [vmem:[#allocation2] sm:$0xff] %v2130_v55  ;;  %2538 = vmatmul.mubr.f32.vlgmr.msra.gmra.mrb[2].mxu0 %v2130_v55  ;;  %2609 = vmatmul.mubr.f32.vlgmr.msra.gmra.mrb[2].mxu1 %v2130_v55  ;;  %v4573_v55 = vld [vmem:[%s5369_s12 + $0x38] sm:$0xff] (!%p3132_p6)  }
 0x3fd   : > { %3784 = vmatpush3.bf16.msra.mxu0 %v3151_v57  ;;  %3247 = vmatprep.mubr.msk.f32.mxu0 %vm4669_vm0, %v4667_v15  ;;  %v2621_v15 = vrot.slane %v3127_v1, %v2085_v21 }
 0x3fe   : > { %3785 = vmatprep.subr.bf16.mxu0 %v4668_v56 }
 0x401   : > { %3787 = vmatpush3.bf16.msra.mxu0 %v3182_v58 }
 0x402   : > { %3788 = vmatprep.subr.bf16.mxu0 %v4668_v56 }
 0x405   : > { %3790 = vmatpush3.bf16.msra.mxu0 %v3183_v59 }
 0x406   : > { %3791 = vmatprep.subr.bf16.mxu0 %v4668_v56 }
 0x409   : > { %3793 = vmatpush3.bf16.msra.mxu0 %v3184_v60 }
 0x40a   : > { %3794 = vmatprep.subr.bf16.mxu0 %v4668_v56 }
 0x40d   : > { %3796 = vmatpush3.bf16.msra.mxu0 %v3185_v61  ;;  %v4672_v61 = vmov (!%p3132_p6), 1.0|1.0  }
 0x40e   : > { %3797 = vmatprep.subr.bf16.mxu0 %v4668_v56 }
 0x411   : > { %3799 = vmatpush3.bf16.msra.mxu0 %v3186_v62 }
 0x412   : > { %3800 = vmatprep.subr.bf16.mxu0 %v4668_v56 }
 0x415   : > { %3802 = vmatpush3.bf16.msra.mxu0 %v3187_v63  ;;  %v2916_v63 = vld [vmem:[%s4840_s23] sm:$0xff] (!%p3132_p6) }
 0x416   : > { %3803 = vmatprep.subr.bf16.mxu0 %v4668_v56 }
 0x419   : > { %3805 = vmatpush3.bf16.msra.mxu0 %v3188_v0 }
 0x41a   : > { %3250 = vmatprep.subr.bf16.mxu0 (!%p3132_p6), %v4670_v46 }
 0x4cf   : > { %v2539_v4 = vpop.f32.mrb[2].mxu0  ;;  %v2610_v5 = vpop.f32.mrb[2].mxu1 }
 0x4d0   : > { %v2638_v6 = vadd.f32 %v2621_v15, %v2539_v4  ;;  %v2541_v7 = vpop.f32.mrb[3].mxu0  ;;  %v2612_v8 = vpop.f32.mrb[3].mxu1  ;;  %v2640_v17 = vadd.f32 %v2629_v14, %v2610_v5 }
 0x4d1   : > { %v2639_v9 = vadd.f32 %v2625_v2, %v2541_v7  ;;  %v2641_v13 = vadd.f32 %v2633_v12, %v2612_v8 }
 0x4d2   : > { %v3128_v10 = vmul.f32 -1.442695, %v2638_v6 }
 0x4d3   : > { %v3129_v11 = vmul.f32 -1.442695, %v2639_v9  ;;  %v3130_v16 = vmul.f32 -1.442695, %v2641_v13 }
 0x4d4   : > { %4550 = vpow2.f32 %v3128_v10 }
 0x4d5   : > { %4552 = vpow2.f32 %v3129_v11 }
 0x4d6   : > { %4554 = vpow2.f32 %v3130_v16 }
 0x4d7   : > { %4556 = vtanh.f32 %v2640_v17 }
 0x4de   : > { %v4551_v18 = vpop.eup %4550 }
 0x4df   : > { %v4553_v21 = vpop.eup %4552  ;;  %v2645_v22 = vadd.f32 1.0, %v4551_v18 }
 0x4e0   : > { %v2651_v23 = vadd.f32 1.0, %v4553_v21  ;;  %v4555_v24 = vpop.eup %4554 }
 0x4e1   : > { %4558 = vrcp.f32 %v2645_v22  ;;  %v4557_v25 = vpop.eup %4556  ;;  %v2658_v30 = vadd.f32 1.0, %v4555_v24 }
 0x4e2   : > { %4560 = vrcp.f32 %v2651_v23 }
 0x4e3   : > { %4562 = vrcp.f32 %v2658_v30 }
 0x4eb   : > { %v4559_v27 = vpop.eup %4558 }
 0x4ec   : > { %v4561_v28 = vpop.eup %4560  ;;  %v2662_v29 = vmul.f32 %v4559_v27, %v4557_v25 }
 0x4ed   : > { %v2661_v20 = vmul.f32 %v4561_v28, %v2136_v26  ;;  %v4563_v32 = vpop.eup %4562 }
 0x4ef   : > { %v2663_v31 = vadd.f32 %v2662_v29, %v2661_v20 }
 0x4f1   : > { %2667 = vst [vmem:[#allocation3 + $0x8] sm:$0xff] %v2663_v31  ;;  %4564 = vtanh.f32 %v2663_v31 }
 0x4fb   : > { %v4565_v33 = vpop.eup %4564 }
 0x4fc   : > { %v2665_v34 = vmul.f32 %v4565_v33, %v4563_v32 }
 0x4fe   : > { %2666 = vst [vmem:[#allocation2 + $0x8] sm:$0xff] %v2665_v34  ;;  %3248 = vmatmul.mubr.f32.vlgmr.msra.gmra.mrb[4].mxu0 %v2665_v34 }
 0x4ff   : > { %3251 = vmatpush3.bf16.msra.mxu0 (!%p3132_p6), %v4566_v45  ;;  %3266 = vmatprep.mubr.msk.bf16.mxu0 (!%p3132_p6), %vm4671_vm4, %v4670_v46 }
 0x500   : > { %3252 = vmatprep.subr.bf16.mxu0 (!%p3132_p6), %v4670_v46 }
 0x503   : > { %3253 = vmatpush3.bf16.msra.mxu0 (!%p3132_p6), %v4567_v19 }
 0x504   : > { %3254 = vmatprep.subr.bf16.mxu0 (!%p3132_p6), %v4670_v46 }
 0x507   : > { %3255 = vmatpush3.bf16.msra.mxu0 (!%p3132_p6), %v4568_v47 }
 0x508   : > { %3256 = vmatprep.subr.bf16.mxu0 (!%p3132_p6), %v4670_v46 }
 0x50b   : > { %3257 = vmatpush3.bf16.msra.mxu0 (!%p3132_p6), %v4569_v48 }
 0x50c   : > { %3258 = vmatprep.subr.bf16.mxu0 (!%p3132_p6), %v4670_v46 }
 0x50f   : > { %3259 = vmatpush3.bf16.msra.mxu0 (!%p3132_p6), %v4570_v3 }
 0x510   : > { %3260 = vmatprep.subr.bf16.mxu0 (!%p3132_p6), %v4670_v46 }
 0x513   : > { %3261 = vmatpush3.bf16.msra.mxu0 (!%p3132_p6), %v4571_v49 }
 0x514   : > { %3262 = vmatprep.subr.bf16.mxu0 (!%p3132_p6), %v4670_v46 }
 0x517   : > { %3263 = vmatpush3.bf16.msra.mxu0 (!%p3132_p6), %v4572_v50 }
 0x518   : > { %3264 = vmatprep.subr.bf16.mxu0 (!%p3132_p6), %v4670_v46 }
 0x51b   : > { %3265 = vmatpush3.bf16.msra.mxu0 (!%p3132_p6), %v4573_v55 }
 0x5ce   : > { %2782 = sbr.rel (%p3132_p6) target bundleno = 2148 (0x864), region = 96 }
 0x5d1   : > { %v2773_v36 = vpop.f32.mrb[4].mxu0 }
 0x5d2   : > { %v2774_v37 = vadd.f32 %v3131_v35, %v2773_v36  ;;  %v3249_v38 = vpop.f32.mrb[5].mxu0 }
 0x5d4   : > { %2777 = vst [vmem:[%s4845_s26] sm:$0xff] %v2774_v37  ;;  %v2786_v40 = vsel (!%p3132_p6), %vm2785_vm1, %v2774_v37, -1e+30  ;;  %s2914_s26 = sld [smem:[#allocation6 + %s2913_s14]] (!%p3132_p6) }
 0x5d5   : > { %2787 = vmax.xlane.f32.xlu0 %v2786_v40 }
 0x5da   : > { %p2915_p10 = scmp.ne.s32.totalorder %s2914_s26, 0 }
 0x5dc   : > { %s2917_s18 = scalar_select %p2915_p10, 1, 0 }
 0x5de   : > { %v2918_v62 = vstv %s2917_s18 }
 0x5df   : > { %vm2919_vm7 = vcmp.eq.s32.totalorder %v2918_v62, 1 }
 0x662   : > { %v2788_v41 = vpop.xlane.xlu0 %2787 }
 0x663   : > { %vm2789_vm2 = vcmp.eq.f32.partialorder %v2786_v40, %v2788_v41 }
 0x664   : > { %v2790_v42 = vsel %vm2789_vm2, %v2784_v39, 128 }
 0x665   : > { %v2792_v43 = vshra.s32 %v2790_v42, 16  ;;  %v2791_v51 = vand.u32 65535, %v2790_v42 }
 0x667   : > { %v2794_v44 = vcvt.s32.f32 %v2792_v43  ;;  %v2793_v53 = vcvt.s32.f32 %v2791_v51 }
 0x669   : > { %2795 = vmin.xlane.f32.xlu0 %v2794_v44 }
 0x6f6   : > { %v2796_v52 = vpop.xlane.xlu0 %2795 }
 0x6f7   : > { %vm2797_vm3 = vcmp.eq.f32.partialorder %v2794_v44, %v2796_v52  ;;  %v2802_v56 = vcvt.f32.s32 %v2796_v52 }
 0x6f8   : > { %v2798_v54 = vsel %vm2797_vm3, %v2793_v53, inf }
 0x6f9   : > { %2799 = vmin.xlane.f32.xlu1 %v2798_v54  ;;  %v2803_v58 = vshll.u32 %v2802_v56, 16 }
 0x786   : > { %v2800_v57 = vpop.xlane.xlu1 %2799 }
 0x787   : > { %v2801_v59 = vcvt.f32.s32 %v2800_v57 }
 0x789   : > { %v2804_v60 = vadd.s32 %v2803_v58, %v2801_v59 }
 0x78b   : > { %vm2805_vm5 = vcmp.eq.s32.totalorder %v2784_v39, %v2804_v60 }
 0x78c   : > { %vm3142_vm6 = vmpackc.low %vm2805_vm5, %vm2805_vm5 }
 0x78d   : > { %3267 = vmatmul.mubr.msk.bf16.vlgmr.msra.gmra.mrb[0].mxu0 %vm3142_vm6, %v4672_v61 }
 0x860   : > { %v2907_v0 = vpop.f32.mrb[0].mxu0 }
 0x861   : > { %v2920_v1 = vsel %vm2919_vm7, %v2916_v63, %v2907_v0  ;;  %v3268_v15 = vpop.f32.mrb[1].mxu0 }
 0x862   : > { %2921 = vst [vmem:[#allocation4] sm:$0xff] %v2920_v1  ;;  %v2910_v2 = vpop.f32.mrb[2].mxu0 }
 0x863   : > { %v3269_v4 = vpop.f32.mrb[3].mxu0 }
 0x864 PF: > { %s31_s30 = sadd.s32 1, %s4658_s30  }
 0x865   : > { %p28_p12 = scmp.ge.s32.totalorder %s31_s30, 17  }
 0x867   :  { %30 = sbr.rel (!%p28_p12) target bundleno = 17 (0x11), region = 140 }
 0x86e   :  { %2950 = vsyncpa [#allocation8], 1 }
 0x86f   :  { %2952 = vsyncpa [#allocation8 + $0x1], 1 }
 0x870   :  { %2953 = vsyncpa [#allocation10], 1 }

</bundles_post_ra>
